<compile_context>
chip_gen: v7x
topology: tpu7x:2x2x1
jax: 0.10.0
libtpu: 0.0.40
codegen_flags: <defaults>
</compile_context>

<pallas_src>
import math
import functools

import jax
import jax.numpy as jnp
from jax.experimental import pallas as pl
from jax.experimental.pallas import tpu as pltpu


# ----------------------------- kernel helpers ------------------------------

def _modulated_layernorm(x, shift, scale, eps=1e-6):
    """LayerNorm (no affine) followed by AdaLN modulate, reusing centered x."""
    mu = jnp.mean(x, axis=-1, keepdims=True)
    xc = x - mu
    var = jnp.mean(xc * xc, axis=-1, keepdims=True)
    h = xc * jax.lax.rsqrt(var + eps)
    return h * (1.0 + scale) + shift


def _gelu_tanh(x):
    c = math.sqrt(2.0 / math.pi)
    return 0.5 * x * (1.0 + jnp.tanh(c * (x + 0.044715 * x * x * x)))


# --------------------------------- kernel ----------------------------------

def sdt_block_kernel(
    alpha_ref,    # SMEM (1,)
    x_ref,        # VMEM (1, N, C)
    mod_ref,      # VMEM (1, 6, C)   precomputed adaLN modulation rows
    w_qkv_ref,    # VMEM (C, 3C)
    b_qkv_ref,    # VMEM (1, 3C)
    w_proj_ref,   # VMEM (H, D, C)   output-proj weight, head-major rows
    b_proj_ref,   # VMEM (1, C)
    w_fc1_ref,    # VMEM (C, Hm)
    b_fc1_ref,    # VMEM (1, Hm)
    w_fc2_ref,    # VMEM (Hm, C)
    b_fc2_ref,    # VMEM (1, C)
    out_ref,      # VMEM (1, N, C)
    *,
    num_heads: int,
):
    f32 = jnp.float32
    x = x_ref[0].astype(f32)                # (N, C)
    _, C = x.shape
    H = num_heads
    D = C // H
    scale = 1.0 / math.sqrt(D)
    alpha = alpha_ref[0].astype(f32)

    mods = mod_ref[0].astype(f32)           # (6, C)
    shift_msa, scale_msa, gate_msa = mods[0:1], mods[1:2], mods[2:3]
    shift_mlp, scale_mlp, gate_mlp = mods[3:4], mods[4:5], mods[5:6]

    # --------------------------- attention branch ---------------------------
    h = _modulated_layernorm(x, shift_msa, scale_msa)
    qkv = (jnp.dot(h, w_qkv_ref[...], preferred_element_type=f32)
           + b_qkv_ref[...].astype(f32))                              # (N, 3C)

    # Split heads once into (H, N, D) leading-axis stacks.
    q = jnp.stack([qkv[:, i * D:(i + 1) * D] for i in range(H)], axis=0)
    k = jnp.stack([qkv[:, C + i * D:C + (i + 1) * D] for i in range(H)], axis=0)
    v = jnp.stack([qkv[:, 2 * C + i * D:2 * C + (i + 1) * D] for i in range(H)],
                  axis=0)

    s = jnp.einsum("hnd,hmd->hnm", q, k, preferred_element_type=f32) * scale
    s = s - jnp.max(s, axis=-1, keepdims=True)
    p = jnp.exp(s)
    p = p * pl.reciprocal(jnp.sum(p, axis=-1, keepdims=True), approx=True)
    o = jnp.einsum("hnm,hmd->hnd", p, v, preferred_element_type=f32)  # (H, N, D)

    # Head merge fused into the output projection: w_proj is stored (H, D, C),
    # so sum_h o[h] @ w_proj[h] == concat_heads(o) @ W_proj, with no concat.
    proj = jnp.einsum("hnd,hdc->hnc", o, w_proj_ref[...].astype(f32),
                      preferred_element_type=f32)                     # (H, N, C)
    attn = jnp.sum(proj, axis=0) + b_proj_ref[...].astype(f32)        # (N, C)

    x1 = x + (alpha * gate_msa) * attn

    # ------------------------------ MLP branch ------------------------------
    h2 = _modulated_layernorm(x1, shift_mlp, scale_mlp)
    f = (jnp.dot(h2, w_fc1_ref[...], preferred_element_type=f32)
         + b_fc1_ref[...].astype(f32))
    f = _gelu_tanh(f)
    f = (jnp.dot(f, w_fc2_ref[...], preferred_element_type=f32)
         + b_fc2_ref[...].astype(f32))

    out_ref[0] = (x1 + (alpha * gate_mlp) * f).astype(out_ref.dtype)


# ------------------------------- wrapper ------------------------------------

def sdt_block(x, cond, params, num_heads, *, single_buffer_weights=True):
    B, N, C = x.shape
    H = num_heads
    D = C // H
    Hm = params["w_fc1_t"].shape[1]
    f32 = jnp.float32

    # adaLN-Zero conditioning hoisted out of the kernel.  One fused
    # (B, Dc) @ (Dc, 6C) matmul; chunk i of torch .chunk(6, dim=1) == mod[:, i].
    c = cond.astype(f32)
    c = c * jax.nn.sigmoid(c)                                   # SiLU
    mod = c @ params["w_ada_t"].astype(f32) + params["b_ada"].astype(f32)
    mod = mod.reshape(B, 6, C)

    # Output-projection weight in head-major layout (H, D, C).
    w_proj_hdc = params["w_proj_t"].reshape(H, D, C)

    def weight_spec(shape):
        index_map = lambda b: (0,) * len(shape)
        if single_buffer_weights:
            # Constant index_map across the grid -> never re-fetched; double
            # buffering would only duplicate the weight in VMEM.
            return pl.BlockSpec(shape, index_map, pipeline_mode=pl.Buffered(1))
        return pl.BlockSpec(shape, index_map)

    # ---- cost estimate (per whole call) ----
    flops_per_b = (2 * N * C * 3 * C          # qkv projection
                   + 4 * N * N * C            # scores + weighted sum
                   + 2 * N * C * C            # output projection
                   + 4 * N * C * Hm)          # mlp fc1 + fc2
    itemsize = jnp.dtype(x.dtype).itemsize
    w_bytes = 4 * (C * 3 * C + 3 * C + C * C + C + C * Hm + Hm + Hm * C + C)
    cost = pl.CostEstimate(
        flops=B * flops_per_b,
        transcendentals=B * (H * N * N + N * Hm + 4 * N),
        bytes_accessed=2 * B * N * C * itemsize + B * 6 * C * 4 + w_bytes,
    )

    # ---- explicit VMEM budget (weights single-buffered + activations) ----
    work_bytes = 4 * (4 * N * C + 6 * C + N * 3 * C + 3 * H * N * D
                      + 2 * H * N * N + H * N * C + N * Hm + 2 * N * C)
    vmem_limit = int(min(96 * 1024 * 1024,
                         max(32 * 1024 * 1024, 2 * (work_bytes + w_bytes))))

    kernel = functools.partial(sdt_block_kernel, num_heads=num_heads)
    return pl.pallas_call(
        kernel,
        out_shape=jax.ShapeDtypeStruct((B, N, C), x.dtype),
        grid=(B,),
        in_specs=[
            pl.BlockSpec(memory_space=pltpu.MemorySpace.SMEM),     # alpha
            pl.BlockSpec((1, N, C), lambda b: (b, 0, 0)),          # x
            pl.BlockSpec((1, 6, C), lambda b: (b, 0, 0)),          # mod rows
            weight_spec((C, 3 * C)),                               # w_qkv
            weight_spec((1, 3 * C)),                               # b_qkv
            weight_spec((H, D, C)),                                # w_proj
            weight_spec((1, C)),                                   # b_proj
            weight_spec((C, Hm)),                                  # w_fc1
            weight_spec((1, Hm)),                                  # b_fc1
            weight_spec((Hm, C)),                                  # w_fc2
            weight_spec((1, C)),                                   # b_fc2
        ],
        out_specs=pl.BlockSpec((1, N, C), lambda b: (b, 0, 0)),
        compiler_params=pltpu.CompilerParams(
            dimension_semantics=("parallel",),
            vmem_limit_bytes=vmem_limit,
        ),
        cost_estimate=cost,
    )(
        params["alpha"], x, mod,
        params["w_qkv_t"], params["b_qkv"].reshape(1, -1),
        w_proj_hdc, params["b_proj"].reshape(1, -1),
        params["w_fc1_t"], params["b_fc1"].reshape(1, -1),
        params["w_fc2_t"], params["b_fc2"].reshape(1, -1),
    )


# --------------------------- pure-JAX reference ------------------------------

def sdt_block_ref(x, cond, p, num_heads):
    B, N, C = x.shape
    D = C // num_heads
    alpha = p["alpha"][0]

    c = cond * jax.nn.sigmoid(cond)
    mod = c @ p["w_ada_t"] + p["b_ada"]                    # (B, 6C)
    sm, scm, gm, sp, scp, gp = jnp.split(mod, 6, axis=1)

    def ln(h):
        mu = h.mean(-1, keepdims=True)
        var = ((h - mu) ** 2).mean(-1, keepdims=True)
        return (h - mu) / jnp.sqrt(var + 1e-6)

    h = ln(x) * (1 + scm[:, None, :]) + sm[:, None, :]
    qkv = h @ p["w_qkv_t"] + p["b_qkv"]                    # (B, N, 3C)
    qkv = qkv.reshape(B, N, 3, num_heads, D).transpose(2, 0, 3, 1, 4)
    q, k, v = qkv[0], qkv[1], qkv[2]
    att = (q @ jnp.swapaxes(k, -2, -1)) * (D ** -0.5)
    att = jax.nn.softmax(att, axis=-1)
    out = (att @ v).transpose(0, 2, 1, 3).reshape(B, N, C)
    out = out @ p["w_proj_t"] + p["b_proj"]
    x1 = x + alpha * gm[:, None, :] * out

    h2 = ln(x1) * (1 + scp[:, None, :]) + sp[:, None, :]
    f = h2 @ p["w_fc1_t"] + p["b_fc1"]
    f = 0.5 * f * (1 + jnp.tanh(math.sqrt(2 / math.pi) * (f + 0.044715 * f ** 3)))
    f = f @ p["w_fc2_t"] + p["b_fc2"]
    return x1 + alpha * gp[:, None, :] * f


# ---------------------------------- main -------------------------------------

if __name__ == "__main__":
    B, N, C = 2, 8, 32
    num_heads = 4
    cond_dim = 64
    mlp_ratio = 4.0
    Hm = int(C * mlp_ratio)

    key = jax.random.PRNGKey(0)
    ks = jax.random.split(key, 16)
    init = lambda k, shape, s=0.02: (s * jax.random.normal(k, shape)).astype(jnp.float32)

    params = {
        # adaLN_modulation linear: torch weight (6C, cond_dim) -> store transpose.
        "w_ada_t": init(ks[0], (cond_dim, 6 * C)),
        "b_ada":   init(ks[1], (6 * C,)),
        # attention qkv / proj (torch weights are (out, in) -> store transposes).
        "w_qkv_t":  init(ks[2], (C, 3 * C)),
        "b_qkv":    init(ks[3], (3 * C,)),
        "w_proj_t": init(ks[4], (C, C)),
        "b_proj":   init(ks[5], (C,)),
        # mlp
        "w_fc1_t": init(ks[6], (C, Hm)),
        "b_fc1":   init(ks[7], (Hm,)),
        "w_fc2_t": init(ks[8], (Hm, C)),
        "b_fc2":   init(ks[9], (C,)),
        # nn.Parameter(torch.zeros(1)) -> zero at real init; use a nonzero value
        # here so both residual branches are exercised.
        "alpha": jnp.array([0.5], dtype=jnp.float32),
    }

    x = jax.random.normal(ks[10], (B, N, C), dtype=jnp.float32)
    cond = jax.random.normal(ks[11], (B, cond_dim), dtype=jnp.float32)

    def run(single_buffer):
        return jax.block_until_ready(
            sdt_block(x, cond, params, num_heads,
                      single_buffer_weights=single_buffer))

    try:
        out = run(True)
    except Exception:
        # Capability fallback: if this JAX/Mosaic build rejects single-buffered
        # weight BlockSpecs (pl.Buffered(1)), rerun with default buffering.
        out = run(False)

    ref = sdt_block_ref(x, cond, params, num_heads)
    assert out.shape == (B, N, C)
    # Tolerance relaxed slightly for pl.reciprocal(approx=True) in the softmax.
    assert jnp.allclose(out, ref, rtol=1e-3, atol=1e-3), (
        float(jnp.max(jnp.abs(out - ref))))

    print("KERNEL_OK")
</pallas_src>

<mosaic_0001>
module attributes {stable_mosaic.version = 11 : i64} {
  func.func @sdt_block_kernel(%arg0: i32, %arg1: memref<1xf32, #tpu.memory_space<smem>>, %arg2: memref<1x8x32xf32, #tpu.memory_space<vmem>>, %arg3: memref<1x6x32xf32, #tpu.memory_space<vmem>>, %arg4: memref<32x96xf32, #tpu.memory_space<vmem>>, %arg5: memref<1x96xf32, #tpu.memory_space<vmem>>, %arg6: memref<4x8x32xf32, #tpu.memory_space<vmem>>, %arg7: memref<1x32xf32, #tpu.memory_space<vmem>>, %arg8: memref<32x128xf32, #tpu.memory_space<vmem>>, %arg9: memref<1x128xf32, #tpu.memory_space<vmem>>, %arg10: memref<128x32xf32, #tpu.memory_space<vmem>>, %arg11: memref<1x32xf32, #tpu.memory_space<vmem>>, %arg12: memref<1x8x32xf32, #tpu.memory_space<vmem>>) attributes {dimension_semantics = [#tpu.dimension_semantics<parallel>], iteration_bounds = array<i64: 2>, scalar_prefetch = 0 : i64, scratch_operands = 0 : i64, tpu.core_type = #tpu.core_type<tc>, window_params = [{transform_indices = @transform_0, window_bounds = array<i64: 1>}, {transform_indices = @transform_1, window_bounds = array<i64: 1, 8, 32>}, {transform_indices = @transform_2, window_bounds = array<i64: 1, 6, 32>}, {pipeline_mode = #tpu.pipeline_mode<synchronous>, transform_indices = @transform_3, window_bounds = array<i64: 32, 96>}, {pipeline_mode = #tpu.pipeline_mode<synchronous>, transform_indices = @transform_4, window_bounds = array<i64: 1, 96>}, {pipeline_mode = #tpu.pipeline_mode<synchronous>, transform_indices = @transform_5, window_bounds = array<i64: 4, 8, 32>}, {pipeline_mode = #tpu.pipeline_mode<synchronous>, transform_indices = @transform_6, window_bounds = array<i64: 1, 32>}, {pipeline_mode = #tpu.pipeline_mode<synchronous>, transform_indices = @transform_7, window_bounds = array<i64: 32, 128>}, {pipeline_mode = #tpu.pipeline_mode<synchronous>, transform_indices = @transform_8, window_bounds = array<i64: 1, 128>}, {pipeline_mode = #tpu.pipeline_mode<synchronous>, transform_indices = @transform_9, window_bounds = array<i64: 128, 32>}, {pipeline_mode = #tpu.pipeline_mode<synchronous>, transform_indices = @transform_10, window_bounds = array<i64: 1, 32>}, {transform_indices = @transform_11, window_bounds = array<i64: 1, 8, 32>}]} {
    %c0 = arith.constant 0 : index
    %c0_0 = arith.constant 0 : index
    %c0_1 = arith.constant 0 : index
    %0 = vector.load %arg2[%c0, %c0_0, %c0_1] : memref<1x8x32xf32, #tpu.memory_space<vmem>>, vector<1x8x32xf32>
    %1 = vector.shape_cast %0 : vector<1x8x32xf32> to vector<8x32xf32>
    %c0_2 = arith.constant 0 : index
    %2 = memref.load %arg1[%c0_2] : memref<1xf32, #tpu.memory_space<smem>>
    %c0_3 = arith.constant 0 : index
    %c0_4 = arith.constant 0 : index
    %c0_5 = arith.constant 0 : index
    %3 = vector.load %arg3[%c0_3, %c0_4, %c0_5] : memref<1x6x32xf32, #tpu.memory_space<vmem>>, vector<1x6x32xf32>
    %4 = vector.shape_cast %3 : vector<1x6x32xf32> to vector<6x32xf32>
    %5 = vector.extract_strided_slice %4 {offsets = [0, 0], sizes = [1, 32], strides = [1, 1]} : vector<6x32xf32> to vector<1x32xf32>
    %6 = vector.extract_strided_slice %4 {offsets = [1, 0], sizes = [1, 32], strides = [1, 1]} : vector<6x32xf32> to vector<1x32xf32>
    %7 = vector.extract_strided_slice %4 {offsets = [2, 0], sizes = [1, 32], strides = [1, 1]} : vector<6x32xf32> to vector<1x32xf32>
    %8 = vector.extract_strided_slice %4 {offsets = [3, 0], sizes = [1, 32], strides = [1, 1]} : vector<6x32xf32> to vector<1x32xf32>
    %9 = vector.extract_strided_slice %4 {offsets = [4, 0], sizes = [1, 32], strides = [1, 1]} : vector<6x32xf32> to vector<1x32xf32>
    %10 = vector.extract_strided_slice %4 {offsets = [5, 0], sizes = [1, 32], strides = [1, 1]} : vector<6x32xf32> to vector<1x32xf32>
    %cst = arith.constant dense<0.000000e+00> : vector<8xf32>
    %11 = vector.multi_reduction <add>, %1, %cst [1] : vector<8x32xf32> to vector<8xf32>
    %12 = vector.shape_cast %11 : vector<8xf32> to vector<8x1xf32>
    %cst_6 = arith.constant 3.200000e+01 : f32
    %13 = vector.broadcast %cst_6 : f32 to vector<8x1xf32>
    %14 = arith.divf %12, %13 : vector<8x1xf32>
    %15 = vector.broadcast %14 : vector<8x1xf32> to vector<8x32xf32>
    %16 = arith.subf %1, %15 : vector<8x32xf32>
    %17 = arith.mulf %16, %16 : vector<8x32xf32>
    %cst_7 = arith.constant dense<0.000000e+00> : vector<8xf32>
    %18 = vector.multi_reduction <add>, %17, %cst_7 [1] : vector<8x32xf32> to vector<8xf32>
    %19 = vector.shape_cast %18 : vector<8xf32> to vector<8x1xf32>
    %cst_8 = arith.constant 3.200000e+01 : f32
    %20 = vector.broadcast %cst_8 : f32 to vector<8x1xf32>
    %21 = arith.divf %19, %20 : vector<8x1xf32>
    %cst_9 = arith.constant 9.99999997E-7 : f32
    %22 = vector.broadcast %cst_9 : f32 to vector<8x1xf32>
    %23 = arith.addf %21, %22 : vector<8x1xf32>
    %24 = math.rsqrt %23 : vector<8x1xf32>
    %25 = vector.broadcast %24 : vector<8x1xf32> to vector<8x32xf32>
    %26 = arith.mulf %16, %25 : vector<8x32xf32>
    %cst_10 = arith.constant 1.000000e+00 : f32
    %27 = vector.broadcast %cst_10 : f32 to vector<1x32xf32>
    %28 = arith.addf %27, %6 : vector<1x32xf32>
    %29 = vector.broadcast %28 : vector<1x32xf32> to vector<8x32xf32>
    %30 = arith.mulf %26, %29 : vector<8x32xf32>
    %31 = vector.broadcast %5 : vector<1x32xf32> to vector<8x32xf32>
    %32 = arith.addf %30, %31 : vector<8x32xf32>
    %c0_11 = arith.constant 0 : index
    %c0_12 = arith.constant 0 : index
    %33 = vector.load %arg4[%c0_11, %c0_12] : memref<32x96xf32, #tpu.memory_space<vmem>>, vector<32x96xf32>
    %cst_13 = arith.constant dense<0.000000e+00> : vector<8x96xf32>
    %34 = tpu.matmul %32, %33, %cst_13 {dimension_numbers = #tpu.dot_dimension_numbers<[1], [0], [0], [1], [0, 0, 1, 1], [], []>} : vector<8x32xf32>, vector<32x96xf32>, vector<8x96xf32> -> vector<8x96xf32>
    %c0_14 = arith.constant 0 : index
    %c0_15 = arith.constant 0 : index
    %35 = vector.load %arg5[%c0_14, %c0_15] : memref<1x96xf32, #tpu.memory_space<vmem>>, vector<1x96xf32>
    %36 = vector.broadcast %35 : vector<1x96xf32> to vector<8x96xf32>
    %37 = arith.addf %34, %36 : vector<8x96xf32>
    %38 = vector.extract_strided_slice %37 {offsets = [0, 0], sizes = [8, 8], strides = [1, 1]} : vector<8x96xf32> to vector<8x8xf32>
    %39 = vector.extract_strided_slice %37 {offsets = [0, 8], sizes = [8, 8], strides = [1, 1]} : vector<8x96xf32> to vector<8x8xf32>
    %40 = vector.extract_strided_slice %37 {offsets = [0, 16], sizes = [8, 8], strides = [1, 1]} : vector<8x96xf32> to vector<8x8xf32>
    %41 = vector.extract_strided_slice %37 {offsets = [0, 24], sizes = [8, 8], strides = [1, 1]} : vector<8x96xf32> to vector<8x8xf32>
    %42 = vector.shape_cast %38 : vector<8x8xf32> to vector<1x8x8xf32>
    %43 = vector.shape_cast %39 : vector<8x8xf32> to vector<1x8x8xf32>
    %44 = vector.shape_cast %40 : vector<8x8xf32> to vector<1x8x8xf32>
    %45 = vector.shape_cast %41 : vector<8x8xf32> to vector<1x8x8xf32>
    %46 = tpu.concatenate %42, %43, %44, %45 in 0 : vector<1x8x8xf32>, vector<1x8x8xf32>, vector<1x8x8xf32>, vector<1x8x8xf32> -> vector<4x8x8xf32>
    %47 = vector.extract_strided_slice %37 {offsets = [0, 32], sizes = [8, 8], strides = [1, 1]} : vector<8x96xf32> to vector<8x8xf32>
    %48 = vector.extract_strided_slice %37 {offsets = [0, 40], sizes = [8, 8], strides = [1, 1]} : vector<8x96xf32> to vector<8x8xf32>
    %49 = vector.extract_strided_slice %37 {offsets = [0, 48], sizes = [8, 8], strides = [1, 1]} : vector<8x96xf32> to vector<8x8xf32>
    %50 = vector.extract_strided_slice %37 {offsets = [0, 56], sizes = [8, 8], strides = [1, 1]} : vector<8x96xf32> to vector<8x8xf32>
    %51 = vector.shape_cast %47 : vector<8x8xf32> to vector<1x8x8xf32>
    %52 = vector.shape_cast %48 : vector<8x8xf32> to vector<1x8x8xf32>
    %53 = vector.shape_cast %49 : vector<8x8xf32> to vector<1x8x8xf32>
    %54 = vector.shape_cast %50 : vector<8x8xf32> to vector<1x8x8xf32>
    %55 = tpu.concatenate %51, %52, %53, %54 in 0 : vector<1x8x8xf32>, vector<1x8x8xf32>, vector<1x8x8xf32>, vector<1x8x8xf32> -> vector<4x8x8xf32>
    %56 = vector.extract_strided_slice %37 {offsets = [0, 64], sizes = [8, 8], strides = [1, 1]} : vector<8x96xf32> to vector<8x8xf32>
    %57 = vector.extract_strided_slice %37 {offsets = [0, 72], sizes = [8, 8], strides = [1, 1]} : vector<8x96xf32> to vector<8x8xf32>
    %58 = vector.extract_strided_slice %37 {offsets = [0, 80], sizes = [8, 8], strides = [1, 1]} : vector<8x96xf32> to vector<8x8xf32>
    %59 = vector.extract_strided_slice %37 {offsets = [0, 88], sizes = [8, 8], strides = [1, 1]} : vector<8x96xf32> to vector<8x8xf32>
    %60 = vector.shape_cast %56 : vector<8x8xf32> to vector<1x8x8xf32>
    %61 = vector.shape_cast %57 : vector<8x8xf32> to vector<1x8x8xf32>
    %62 = vector.shape_cast %58 : vector<8x8xf32> to vector<1x8x8xf32>
    %63 = vector.shape_cast %59 : vector<8x8xf32> to vector<1x8x8xf32>
    %64 = tpu.concatenate %60, %61, %62, %63 in 0 : vector<1x8x8xf32>, vector<1x8x8xf32>, vector<1x8x8xf32>, vector<1x8x8xf32> -> vector<4x8x8xf32>
    "tpu.trace_start"() <{level = 10 : i32, message = "hnd,hmd->hnm"}> : () -> ()
    %cst_16 = arith.constant dense<0.000000e+00> : vector<4x8x8xf32>
    %65 = tpu.matmul %46, %55, %cst_16 {dimension_numbers = #tpu.dot_dimension_numbers<[2], [2], [1], [1], [0, 0, 0, 1, 1, 1], [0], [0]>} : vector<4x8x8xf32>, vector<4x8x8xf32>, vector<4x8x8xf32> -> vector<4x8x8xf32>
    "tpu.trace_stop"() : () -> ()
    %cst_17 = arith.constant 0.353553385 : f32
    %66 = vector.broadcast %cst_17 : f32 to vector<4x8x8xf32>
    %67 = arith.mulf %65, %66 : vector<4x8x8xf32>
    %cst_18 = arith.constant dense<0xFF800000> : vector<4x8xf32>
    %68 = vector.multi_reduction <maximumf>, %67, %cst_18 [2] : vector<4x8x8xf32> to vector<4x8xf32>
    %69 = vector.shape_cast %68 : vector<4x8xf32> to vector<4x8x1xf32>
    %70 = vector.broadcast %69 : vector<4x8x1xf32> to vector<4x8x8xf32>
    %71 = arith.subf %67, %70 : vector<4x8x8xf32>
    %72 = math.exp %71 : vector<4x8x8xf32>
    %cst_19 = arith.constant dense<0.000000e+00> : vector<4x8xf32>
    %73 = vector.multi_reduction <add>, %72, %cst_19 [2] : vector<4x8x8xf32> to vector<4x8xf32>
    %74 = vector.shape_cast %73 : vector<4x8xf32> to vector<4x8x1xf32>
    %75 = tpu.reciprocal %74 {approx = true} : vector<4x8x1xf32> -> vector<4x8x1xf32>
    %76 = vector.broadcast %75 : vector<4x8x1xf32> to vector<4x8x8xf32>
    %77 = arith.mulf %72, %76 : vector<4x8x8xf32>
    "tpu.trace_start"() <{level = 10 : i32, message = "hnm,hmd->hnd"}> : () -> ()
    %cst_20 = arith.constant dense<0.000000e+00> : vector<4x8x8xf32>
    %78 = tpu.matmul %77, %64, %cst_20 {dimension_numbers = #tpu.dot_dimension_numbers<[2], [1], [1], [2], [0, 0, 0, 1, 1, 2], [0], [0]>} : vector<4x8x8xf32>, vector<4x8x8xf32>, vector<4x8x8xf32> -> vector<4x8x8xf32>
    "tpu.trace_stop"() : () -> ()
    %c0_21 = arith.constant 0 : index
    %c0_22 = arith.constant 0 : index
    %c0_23 = arith.constant 0 : index
    %79 = vector.load %arg6[%c0_21, %c0_22, %c0_23] : memref<4x8x32xf32, #tpu.memory_space<vmem>>, vector<4x8x32xf32>
    "tpu.trace_start"() <{level = 10 : i32, message = "hnd,hdc->hnc"}> : () -> ()
    %cst_24 = arith.constant dense<0.000000e+00> : vector<4x8x32xf32>
    %80 = tpu.matmul %78, %79, %cst_24 {dimension_numbers = #tpu.dot_dimension_numbers<[2], [1], [1], [2], [0, 0, 0, 1, 1, 2], [0], [0]>} : vector<4x8x8xf32>, vector<4x8x32xf32>, vector<4x8x32xf32> -> vector<4x8x32xf32>
    "tpu.trace_stop"() : () -> ()
    %cst_25 = arith.constant dense<0.000000e+00> : vector<8x32xf32>
    %81 = vector.multi_reduction <add>, %80, %cst_25 [0] : vector<4x8x32xf32> to vector<8x32xf32>
    %c0_26 = arith.constant 0 : index
    %c0_27 = arith.constant 0 : index
    %82 = vector.load %arg7[%c0_26, %c0_27] : memref<1x32xf32, #tpu.memory_space<vmem>>, vector<1x32xf32>
    %83 = vector.broadcast %82 : vector<1x32xf32> to vector<8x32xf32>
    %84 = arith.addf %81, %83 : vector<8x32xf32>
    %85 = vector.broadcast %2 : f32 to vector<1x32xf32>
    %86 = arith.mulf %85, %7 : vector<1x32xf32>
    %87 = vector.broadcast %86 : vector<1x32xf32> to vector<8x32xf32>
    %88 = arith.mulf %87, %84 : vector<8x32xf32>
    %89 = arith.addf %1, %88 : vector<8x32xf32>
    %cst_28 = arith.constant dense<0.000000e+00> : vector<8xf32>
    %90 = vector.multi_reduction <add>, %89, %cst_28 [1] : vector<8x32xf32> to vector<8xf32>
    %91 = vector.shape_cast %90 : vector<8xf32> to vector<8x1xf32>
    %cst_29 = arith.constant 3.200000e+01 : f32
    %92 = vector.broadcast %cst_29 : f32 to vector<8x1xf32>
    %93 = arith.divf %91, %92 : vector<8x1xf32>
    %94 = vector.broadcast %93 : vector<8x1xf32> to vector<8x32xf32>
    %95 = arith.subf %89, %94 : vector<8x32xf32>
    %96 = arith.mulf %95, %95 : vector<8x32xf32>
    %cst_30 = arith.constant dense<0.000000e+00> : vector<8xf32>
    %97 = vector.multi_reduction <add>, %96, %cst_30 [1] : vector<8x32xf32> to vector<8xf32>
    %98 = vector.shape_cast %97 : vector<8xf32> to vector<8x1xf32>
    %cst_31 = arith.constant 3.200000e+01 : f32
    %99 = vector.broadcast %cst_31 : f32 to vector<8x1xf32>
    %100 = arith.divf %98, %99 : vector<8x1xf32>
    %cst_32 = arith.constant 9.99999997E-7 : f32
    %101 = vector.broadcast %cst_32 : f32 to vector<8x1xf32>
    %102 = arith.addf %100, %101 : vector<8x1xf32>
    %103 = math.rsqrt %102 : vector<8x1xf32>
    %104 = vector.broadcast %103 : vector<8x1xf32> to vector<8x32xf32>
    %105 = arith.mulf %95, %104 : vector<8x32xf32>
    %cst_33 = arith.constant 1.000000e+00 : f32
    %106 = vector.broadcast %cst_33 : f32 to vector<1x32xf32>
    %107 = arith.addf %106, %9 : vector<1x32xf32>
    %108 = vector.broadcast %107 : vector<1x32xf32> to vector<8x32xf32>
    %109 = arith.mulf %105, %108 : vector<8x32xf32>
    %110 = vector.broadcast %8 : vector<1x32xf32> to vector<8x32xf32>
    %111 = arith.addf %109, %110 : vector<8x32xf32>
    %c0_34 = arith.constant 0 : index
    %c0_35 = arith.constant 0 : index
    %112 = vector.load %arg8[%c0_34, %c0_35] : memref<32x128xf32, #tpu.memory_space<vmem>>, vector<32x128xf32>
    %cst_36 = arith.constant dense<0.000000e+00> : vector<8x128xf32>
    %113 = tpu.matmul %111, %112, %cst_36 {dimension_numbers = #tpu.dot_dimension_numbers<[1], [0], [0], [1], [0, 0, 1, 1], [], []>} : vector<8x32xf32>, vector<32x128xf32>, vector<8x128xf32> -> vector<8x128xf32>
    %c0_37 = arith.constant 0 : index
    %c0_38 = arith.constant 0 : index
    %114 = vector.load %arg9[%c0_37, %c0_38] : memref<1x128xf32, #tpu.memory_space<vmem>>, vector<1x128xf32>
    %115 = vector.broadcast %114 : vector<1x128xf32> to vector<8x128xf32>
    %116 = arith.addf %113, %115 : vector<8x128xf32>
    %cst_39 = arith.constant 5.000000e-01 : f32
    %117 = vector.broadcast %cst_39 : f32 to vector<8x128xf32>
    %118 = arith.mulf %117, %116 : vector<8x128xf32>
    %cst_40 = arith.constant 4.471500e-02 : f32
    %119 = vector.broadcast %cst_40 : f32 to vector<8x128xf32>
    %120 = arith.mulf %119, %116 : vector<8x128xf32>
    %121 = arith.mulf %120, %116 : vector<8x128xf32>
    %122 = arith.mulf %121, %116 : vector<8x128xf32>
    %123 = arith.addf %116, %122 : vector<8x128xf32>
    %cst_41 = arith.constant 0.797884583 : f32
    %124 = vector.broadcast %cst_41 : f32 to vector<8x128xf32>
    %125 = arith.mulf %124, %123 : vector<8x128xf32>
    %126 = math.tanh %125 : vector<8x128xf32>
    %cst_42 = arith.constant 1.000000e+00 : f32
    %127 = vector.broadcast %cst_42 : f32 to vector<8x128xf32>
    %128 = arith.addf %127, %126 : vector<8x128xf32>
    %129 = arith.mulf %118, %128 : vector<8x128xf32>
    %c0_43 = arith.constant 0 : index
    %c0_44 = arith.constant 0 : index
    %130 = vector.load %arg10[%c0_43, %c0_44] : memref<128x32xf32, #tpu.memory_space<vmem>>, vector<128x32xf32>
    %cst_45 = arith.constant dense<0.000000e+00> : vector<8x32xf32>
    %131 = tpu.matmul %129, %130, %cst_45 {dimension_numbers = #tpu.dot_dimension_numbers<[1], [0], [0], [1], [0, 0, 1, 1], [], []>} : vector<8x128xf32>, vector<128x32xf32>, vector<8x32xf32> -> vector<8x32xf32>
    %c0_46 = arith.constant 0 : index
    %c0_47 = arith.constant 0 : index
    %132 = vector.load %arg11[%c0_46, %c0_47] : memref<1x32xf32, #tpu.memory_space<vmem>>, vector<1x32xf32>
    %133 = vector.broadcast %132 : vector<1x32xf32> to vector<8x32xf32>
    %134 = arith.addf %131, %133 : vector<8x32xf32>
    %135 = vector.broadcast %2 : f32 to vector<1x32xf32>
    %136 = arith.mulf %135, %10 : vector<1x32xf32>
    %137 = vector.broadcast %136 : vector<1x32xf32> to vector<8x32xf32>
    %138 = arith.mulf %137, %134 : vector<8x32xf32>
    %139 = arith.addf %89, %138 : vector<8x32xf32>
    %c0_48 = arith.constant 0 : index
    %c0_49 = arith.constant 0 : index
    %c0_50 = arith.constant 0 : index
    %140 = vector.load %arg12[%c0_48, %c0_49, %c0_50] : memref<1x8x32xf32, #tpu.memory_space<vmem>>, vector<1x8x32xf32>
    %141 = vector.shape_cast %140 : vector<1x8x32xf32> to vector<8x32xf32>
    %142 = vector.shape_cast %139 : vector<8x32xf32> to vector<1x8x32xf32>
    tpu.vector_store %arg12[%c0_48, %c0_49, %c0_50], %142 {strides = array<i32>} : memref<1x8x32xf32, #tpu.memory_space<vmem>>, vector<1x8x32xf32>,
    return
  }
  func.func @transform_0(%arg0: i32) -> i32 {
    %c0_i32 = arith.constant 0 : i32
    %c0_i32_0 = arith.constant 0 : i32
    return %c0_i32 : i32
  }
  func.func @transform_1(%arg0: i32) -> (i32, i32, i32) {
    %c0_i32 = arith.constant 0 : i32
    %c0_i32_0 = arith.constant 0 : i32
    %c0_i32_1 = arith.constant 0 : i32
    return %arg0, %c0_i32, %c0_i32_0 : i32, i32, i32
  }
  func.func @transform_2(%arg0: i32) -> (i32, i32, i32) {
    %c0_i32 = arith.constant 0 : i32
    %c0_i32_0 = arith.constant 0 : i32
    %c0_i32_1 = arith.constant 0 : i32
    return %arg0, %c0_i32, %c0_i32_0 : i32, i32, i32
  }
  func.func @transform_3(%arg0: i32) -> (i32, i32) {
    %c0_i32 = arith.constant 0 : i32
    %c0_i32_0 = arith.constant 0 : i32
    %c0_i32_1 = arith.constant 0 : i32
    return %c0_i32, %c0_i32_0 : i32, i32
  }
  func.func @transform_4(%arg0: i32) -> (i32, i32) {
    %c0_i32 = arith.constant 0 : i32
    %c0_i32_0 = arith.constant 0 : i32
    %c0_i32_1 = arith.constant 0 : i32
    return %c0_i32, %c0_i32_0 : i32, i32
  }
  func.func @transform_5(%arg0: i32) -> (i32, i32, i32) {
    %c0_i32 = arith.constant 0 : i32
    %c0_i32_0 = arith.constant 0 : i32
    %c0_i32_1 = arith.constant 0 : i32
    %c0_i32_2 = arith.constant 0 : i32
    return %c0_i32, %c0_i32_0, %c0_i32_1 : i32, i32, i32
  }
  func.func @transform_6(%arg0: i32) -> (i32, i32) {
    %c0_i32 = arith.constant 0 : i32
    %c0_i32_0 = arith.constant 0 : i32
    %c0_i32_1 = arith.constant 0 : i32
    return %c0_i32, %c0_i32_0 : i32, i32
  }
  func.func @transform_7(%arg0: i32) -> (i32, i32) {
    %c0_i32 = arith.constant 0 : i32
    %c0_i32_0 = arith.constant 0 : i32
    %c0_i32_1 = arith.constant 0 : i32
    return %c0_i32, %c0_i32_0 : i32, i32
  }
  func.func @transform_8(%arg0: i32) -> (i32, i32) {
    %c0_i32 = arith.constant 0 : i32
    %c0_i32_0 = arith.constant 0 : i32
    %c0_i32_1 = arith.constant 0 : i32
    return %c0_i32, %c0_i32_0 : i32, i32
  }
  func.func @transform_9(%arg0: i32) -> (i32, i32) {
    %c0_i32 = arith.constant 0 : i32
    %c0_i32_0 = arith.constant 0 : i32
    %c0_i32_1 = arith.constant 0 : i32
    return %c0_i32, %c0_i32_0 : i32, i32
  }
  func.func @transform_10(%arg0: i32) -> (i32, i32) {
    %c0_i32 = arith.constant 0 : i32
    %c0_i32_0 = arith.constant 0 : i32
    %c0_i32_1 = arith.constant 0 : i32
    return %c0_i32, %c0_i32_0 : i32, i32
  }
  func.func @transform_11(%arg0: i32) -> (i32, i32, i32) {
    %c0_i32 = arith.constant 0 : i32
    %c0_i32_0 = arith.constant 0 : i32
    %c0_i32_1 = arith.constant 0 : i32
    return %arg0, %c0_i32, %c0_i32_0 : i32, i32, i32
  }
}

module attributes {stable_mosaic.version = 11 : i64} {
  func.func @sdt_block_kernel(%arg0: i32, %arg1: memref<1xf32, #tpu.memory_space<smem>>, %arg2: memref<1x8x32xf32, #tpu.memory_space<vmem>>, %arg3: memref<1x6x32xf32, #tpu.memory_space<vmem>>, %arg4: memref<32x96xf32, #tpu.memory_space<vmem>>, %arg5: memref<1x96xf32, #tpu.memory_space<vmem>>, %arg6: memref<4x8x32xf32, #tpu.memory_space<vmem>>, %arg7: memref<1x32xf32, #tpu.memory_space<vmem>>, %arg8: memref<32x128xf32, #tpu.memory_space<vmem>>, %arg9: memref<1x128xf32, #tpu.memory_space<vmem>>, %arg10: memref<128x32xf32, #tpu.memory_space<vmem>>, %arg11: memref<1x32xf32, #tpu.memory_space<vmem>>, %arg12: memref<1x8x32xf32, #tpu.memory_space<vmem>>) attributes {dimension_semantics = [#tpu.dimension_semantics<parallel>], iteration_bounds = array<i64: 2>, scalar_prefetch = 0 : i64, scratch_operands = 0 : i64, tpu.core_type = #tpu.core_type<tc>, window_params = [{transform_indices = @transform_0, window_bounds = array<i64: 1>}, {transform_indices = @transform_1, window_bounds = array<i64: 1, 8, 32>}, {transform_indices = @transform_2, window_bounds = array<i64: 1, 6, 32>}, {pipeline_mode = #tpu.pipeline_mode<synchronous>, transform_indices = @transform_3, window_bounds = array<i64: 32, 96>}, {pipeline_mode = #tpu.pipeline_mode<synchronous>, transform_indices = @transform_4, window_bounds = array<i64: 1, 96>}, {pipeline_mode = #tpu.pipeline_mode<synchronous>, transform_indices = @transform_5, window_bounds = array<i64: 4, 8, 32>}, {pipeline_mode = #tpu.pipeline_mode<synchronous>, transform_indices = @transform_6, window_bounds = array<i64: 1, 32>}, {pipeline_mode = #tpu.pipeline_mode<synchronous>, transform_indices = @transform_7, window_bounds = array<i64: 32, 128>}, {pipeline_mode = #tpu.pipeline_mode<synchronous>, transform_indices = @transform_8, window_bounds = array<i64: 1, 128>}, {pipeline_mode = #tpu.pipeline_mode<synchronous>, transform_indices = @transform_9, window_bounds = array<i64: 128, 32>}, {pipeline_mode = #tpu.pipeline_mode<synchronous>, transform_indices = @transform_10, window_bounds = array<i64: 1, 32>}, {transform_indices = @transform_11, window_bounds = array<i64: 1, 8, 32>}]} {
    %c0 = arith.constant 0 : index
    %c0_0 = arith.constant 0 : index
    %c0_1 = arith.constant 0 : index
    %0 = vector.load %arg2[%c0, %c0_0, %c0_1] : memref<1x8x32xf32, #tpu.memory_space<vmem>>, vector<1x8x32xf32>
    %1 = vector.shape_cast %0 : vector<1x8x32xf32> to vector<8x32xf32>
    %c0_2 = arith.constant 0 : index
    %2 = memref.load %arg1[%c0_2] : memref<1xf32, #tpu.memory_space<smem>>
    %c0_3 = arith.constant 0 : index
    %c0_4 = arith.constant 0 : index
    %c0_5 = arith.constant 0 : index
    %3 = vector.load %arg3[%c0_3, %c0_4, %c0_5] : memref<1x6x32xf32, #tpu.memory_space<vmem>>, vector<1x6x32xf32>
    %4 = vector.shape_cast %3 : vector<1x6x32xf32> to vector<6x32xf32>
    %5 = vector.extract_strided_slice %4 {offsets = [0, 0], sizes = [1, 32], strides = [1, 1]} : vector<6x32xf32> to vector<1x32xf32>
    %6 = vector.extract_strided_slice %4 {offsets = [1, 0], sizes = [1, 32], strides = [1, 1]} : vector<6x32xf32> to vector<1x32xf32>
    %7 = vector.extract_strided_slice %4 {offsets = [2, 0], sizes = [1, 32], strides = [1, 1]} : vector<6x32xf32> to vector<1x32xf32>
    %8 = vector.extract_strided_slice %4 {offsets = [3, 0], sizes = [1, 32], strides = [1, 1]} : vector<6x32xf32> to vector<1x32xf32>
    %9 = vector.extract_strided_slice %4 {offsets = [4, 0], sizes = [1, 32], strides = [1, 1]} : vector<6x32xf32> to vector<1x32xf32>
    %10 = vector.extract_strided_slice %4 {offsets = [5, 0], sizes = [1, 32], strides = [1, 1]} : vector<6x32xf32> to vector<1x32xf32>
    %cst = arith.constant dense<0.000000e+00> : vector<8xf32>
    %11 = vector.multi_reduction <add>, %1, %cst [1] : vector<8x32xf32> to vector<8xf32>
    %12 = vector.shape_cast %11 : vector<8xf32> to vector<8x1xf32>
    %cst_6 = arith.constant 3.200000e+01 : f32
    %13 = vector.broadcast %cst_6 : f32 to vector<8x1xf32>
    %14 = arith.divf %12, %13 : vector<8x1xf32>
    %15 = vector.broadcast %14 : vector<8x1xf32> to vector<8x32xf32>
    %16 = arith.subf %1, %15 : vector<8x32xf32>
    %17 = arith.mulf %16, %16 : vector<8x32xf32>
    %cst_7 = arith.constant dense<0.000000e+00> : vector<8xf32>
    %18 = vector.multi_reduction <add>, %17, %cst_7 [1] : vector<8x32xf32> to vector<8xf32>
    %19 = vector.shape_cast %18 : vector<8xf32> to vector<8x1xf32>
    %cst_8 = arith.constant 3.200000e+01 : f32
    %20 = vector.broadcast %cst_8 : f32 to vector<8x1xf32>
    %21 = arith.divf %19, %20 : vector<8x1xf32>
    %cst_9 = arith.constant 9.99999997E-7 : f32
    %22 = vector.broadcast %cst_9 : f32 to vector<8x1xf32>
    %23 = arith.addf %21, %22 : vector<8x1xf32>
    %24 = math.rsqrt %23 : vector<8x1xf32>
    %25 = vector.broadcast %24 : vector<8x1xf32> to vector<8x32xf32>
    %26 = arith.mulf %16, %25 : vector<8x32xf32>
    %cst_10 = arith.constant 1.000000e+00 : f32
    %27 = vector.broadcast %cst_10 : f32 to vector<1x32xf32>
    %28 = arith.addf %27, %6 : vector<1x32xf32>
    %29 = vector.broadcast %28 : vector<1x32xf32> to vector<8x32xf32>
    %30 = arith.mulf %26, %29 : vector<8x32xf32>
    %31 = vector.broadcast %5 : vector<1x32xf32> to vector<8x32xf32>
    %32 = arith.addf %30, %31 : vector<8x32xf32>
    %c0_11 = arith.constant 0 : index
    %c0_12 = arith.constant 0 : index
    %33 = vector.load %arg4[%c0_11, %c0_12] : memref<32x96xf32, #tpu.memory_space<vmem>>, vector<32x96xf32>
    %cst_13 = arith.constant dense<0.000000e+00> : vector<8x96xf32>
    %34 = tpu.matmul %32, %33, %cst_13 {dimension_numbers = #tpu.dot_dimension_numbers<[1], [0], [0], [1], [0, 0, 1, 1], [], []>} : vector<8x32xf32>, vector<32x96xf32>, vector<8x96xf32> -> vector<8x96xf32>
    %c0_14 = arith.constant 0 : index
    %c0_15 = arith.constant 0 : index
    %35 = vector.load %arg5[%c0_14, %c0_15] : memref<1x96xf32, #tpu.memory_space<vmem>>, vector<1x96xf32>
    %36 = vector.broadcast %35 : vector<1x96xf32> to vector<8x96xf32>
    %37 = arith.addf %34, %36 : vector<8x96xf32>
    %38 = vector.extract_strided_slice %37 {offsets = [0, 0], sizes = [8, 8], strides = [1, 1]} : vector<8x96xf32> to vector<8x8xf32>
    %39 = vector.extract_strided_slice %37 {offsets = [0, 8], sizes = [8, 8], strides = [1, 1]} : vector<8x96xf32> to vector<8x8xf32>
    %40 = vector.extract_strided_slice %37 {offsets = [0, 16], sizes = [8, 8], strides = [1, 1]} : vector<8x96xf32> to vector<8x8xf32>
    %41 = vector.extract_strided_slice %37 {offsets = [0, 24], sizes = [8, 8], strides = [1, 1]} : vector<8x96xf32> to vector<8x8xf32>
    %42 = vector.shape_cast %38 : vector<8x8xf32> to vector<1x8x8xf32>
    %43 = vector.shape_cast %39 : vector<8x8xf32> to vector<1x8x8xf32>
    %44 = vector.shape_cast %40 : vector<8x8xf32> to vector<1x8x8xf32>
    %45 = vector.shape_cast %41 : vector<8x8xf32> to vector<1x8x8xf32>
    %46 = tpu.concatenate %42, %43, %44, %45 in 0 : vector<1x8x8xf32>, vector<1x8x8xf32>, vector<1x8x8xf32>, vector<1x8x8xf32> -> vector<4x8x8xf32>
    %47 = vector.extract_strided_slice %37 {offsets = [0, 32], sizes = [8, 8], strides = [1, 1]} : vector<8x96xf32> to vector<8x8xf32>
    %48 = vector.extract_strided_slice %37 {offsets = [0, 40], sizes = [8, 8], strides = [1, 1]} : vector<8x96xf32> to vector<8x8xf32>
    %49 = vector.extract_strided_slice %37 {offsets = [0, 48], sizes = [8, 8], strides = [1, 1]} : vector<8x96xf32> to vector<8x8xf32>
    %50 = vector.extract_strided_slice %37 {offsets = [0, 56], sizes = [8, 8], strides = [1, 1]} : vector<8x96xf32> to vector<8x8xf32>
    %51 = vector.shape_cast %47 : vector<8x8xf32> to vector<1x8x8xf32>
    %52 = vector.shape_cast %48 : vector<8x8xf32> to vector<1x8x8xf32>
    %53 = vector.shape_cast %49 : vector<8x8xf32> to vector<1x8x8xf32>
    %54 = vector.shape_cast %50 : vector<8x8xf32> to vector<1x8x8xf32>
    %55 = tpu.concatenate %51, %52, %53, %54 in 0 : vector<1x8x8xf32>, vector<1x8x8xf32>, vector<1x8x8xf32>, vector<1x8x8xf32> -> vector<4x8x8xf32>
    %56 = vector.extract_strided_slice %37 {offsets = [0, 64], sizes = [8, 8], strides = [1, 1]} : vector<8x96xf32> to vector<8x8xf32>
    %57 = vector.extract_strided_slice %37 {offsets = [0, 72], sizes = [8, 8], strides = [1, 1]} : vector<8x96xf32> to vector<8x8xf32>
    %58 = vector.extract_strided_slice %37 {offsets = [0, 80], sizes = [8, 8], strides = [1, 1]} : vector<8x96xf32> to vector<8x8xf32>
    %59 = vector.extract_strided_slice %37 {offsets = [0, 88], sizes = [8, 8], strides = [1, 1]} : vector<8x96xf32> to vector<8x8xf32>
    %60 = vector.shape_cast %56 : vector<8x8xf32> to vector<1x8x8xf32>
    %61 = vector.shape_cast %57 : vector<8x8xf32> to vector<1x8x8xf32>
    %62 = vector.shape_cast %58 : vector<8x8xf32> to vector<1x8x8xf32>
    %63 = vector.shape_cast %59 : vector<8x8xf32> to vector<1x8x8xf32>
    %64 = tpu.concatenate %60, %61, %62, %63 in 0 : vector<1x8x8xf32>, vector<1x8x8xf32>, vector<1x8x8xf32>, vector<1x8x8xf32> -> vector<4x8x8xf32>
    "tpu.trace_start"() <{level = 10 : i32, message = "hnd,hmd->hnm"}> : () -> ()
    %cst_16 = arith.constant dense<0.000000e+00> : vector<4x8x8xf32>
    %65 = tpu.matmul %46, %55, %cst_16 {dimension_numbers = #tpu.dot_dimension_numbers<[2], [2], [1], [1], [0, 0, 0, 1, 1, 1], [0], [0]>} : vector<4x8x8xf32>, vector<4x8x8xf32>, vector<4x8x8xf32> -> vector<4x8x8xf32>
    "tpu.trace_stop"() : () -> ()
    %cst_17 = arith.constant 0.353553385 : f32
    %66 = vector.broadcast %cst_17 : f32 to vector<4x8x8xf32>
    %67 = arith.mulf %65, %66 : vector<4x8x8xf32>
    %cst_18 = arith.constant dense<0xFF800000> : vector<4x8xf32>
    %68 = vector.multi_reduction <maximumf>, %67, %cst_18 [2] : vector<4x8x8xf32> to vector<4x8xf32>
    %69 = vector.shape_cast %68 : vector<4x8xf32> to vector<4x8x1xf32>
    %70 = vector.broadcast %69 : vector<4x8x1xf32> to vector<4x8x8xf32>
    %71 = arith.subf %67, %70 : vector<4x8x8xf32>
    %72 = math.exp %71 : vector<4x8x8xf32>
    %cst_19 = arith.constant dense<0.000000e+00> : vector<4x8xf32>
    %73 = vector.multi_reduction <add>, %72, %cst_19 [2] : vector<4x8x8xf32> to vector<4x8xf32>
    %74 = vector.shape_cast %73 : vector<4x8xf32> to vector<4x8x1xf32>
    %75 = tpu.reciprocal %74 {approx = true} : vector<4x8x1xf32> -> vector<4x8x1xf32>
    %76 = vector.broadcast %75 : vector<4x8x1xf32> to vector<4x8x8xf32>
    %77 = arith.mulf %72, %76 : vector<4x8x8xf32>
    "tpu.trace_start"() <{level = 10 : i32, message = "hnm,hmd->hnd"}> : () -> ()
    %cst_20 = arith.constant dense<0.000000e+00> : vector<4x8x8xf32>
    %78 = tpu.matmul %77, %64, %cst_20 {dimension_numbers = #tpu.dot_dimension_numbers<[2], [1], [1], [2], [0, 0, 0, 1, 1, 2], [0], [0]>} : vector<4x8x8xf32>, vector<4x8x8xf32>, vector<4x8x8xf32> -> vector<4x8x8xf32>
    "tpu.trace_stop"() : () -> ()
    %c0_21 = arith.constant 0 : index
    %c0_22 = arith.constant 0 : index
    %c0_23 = arith.constant 0 : index
    %79 = vector.load %arg6[%c0_21, %c0_22, %c0_23] : memref<4x8x32xf32, #tpu.memory_space<vmem>>, vector<4x8x32xf32>
    "tpu.trace_start"() <{level = 10 : i32, message = "hnd,hdc->hnc"}> : () -> ()
    %cst_24 = arith.constant dense<0.000000e+00> : vector<4x8x32xf32>
    %80 = tpu.matmul %78, %79, %cst_24 {dimension_numbers = #tpu.dot_dimension_numbers<[2], [1], [1], [2], [0, 0, 0, 1, 1, 2], [0], [0]>} : vector<4x8x8xf32>, vector<4x8x32xf32>, vector<4x8x32xf32> -> vector<4x8x32xf32>
    "tpu.trace_stop"() : () -> ()
    %cst_25 = arith.constant dense<0.000000e+00> : vector<8x32xf32>
    %81 = vector.multi_reduction <add>, %80, %cst_25 [0] : vector<4x8x32xf32> to vector<8x32xf32>
    %c0_26 = arith.constant 0 : index
    %c0_27 = arith.constant 0 : index
    %82 = vector.load %arg7[%c0_26, %c0_27] : memref<1x32xf32, #tpu.memory_space<vmem>>, vector<1x32xf32>
    %83 = vector.broadcast %82 : vector<1x32xf32> to vector<8x32xf32>
    %84 = arith.addf %81, %83 : vector<8x32xf32>
    %85 = vector.broadcast %2 : f32 to vector<1x32xf32>
    %86 = arith.mulf %85, %7 : vector<1x32xf32>
    %87 = vector.broadcast %86 : vector<1x32xf32> to vector<8x32xf32>
    %88 = arith.mulf %87, %84 : vector<8x32xf32>
    %89 = arith.addf %1, %88 : vector<8x32xf32>
    %cst_28 = arith.constant dense<0.000000e+00> : vector<8xf32>
    %90 = vector.multi_reduction <add>, %89, %cst_28 [1] : vector<8x32xf32> to vector<8xf32>
    %91 = vector.shape_cast %90 : vector<8xf32> to vector<8x1xf32>
    %cst_29 = arith.constant 3.200000e+01 : f32
    %92 = vector.broadcast %cst_29 : f32 to vector<8x1xf32>
    %93 = arith.divf %91, %92 : vector<8x1xf32>
    %94 = vector.broadcast %93 : vector<8x1xf32> to vector<8x32xf32>
    %95 = arith.subf %89, %94 : vector<8x32xf32>
    %96 = arith.mulf %95, %95 : vector<8x32xf32>
    %cst_30 = arith.constant dense<0.000000e+00> : vector<8xf32>
    %97 = vector.multi_reduction <add>, %96, %cst_30 [1] : vector<8x32xf32> to vector<8xf32>
    %98 = vector.shape_cast %97 : vector<8xf32> to vector<8x1xf32>
    %cst_31 = arith.constant 3.200000e+01 : f32
    %99 = vector.broadcast %cst_31 : f32 to vector<8x1xf32>
    %100 = arith.divf %98, %99 : vector<8x1xf32>
    %cst_32 = arith.constant 9.99999997E-7 : f32
    %101 = vector.broadcast %cst_32 : f32 to vector<8x1xf32>
    %102 = arith.addf %100, %101 : vector<8x1xf32>
    %103 = math.rsqrt %102 : vector<8x1xf32>
    %104 = vector.broadcast %103 : vector<8x1xf32> to vector<8x32xf32>
    %105 = arith.mulf %95, %104 : vector<8x32xf32>
    %cst_33 = arith.constant 1.000000e+00 : f32
    %106 = vector.broadcast %cst_33 : f32 to vector<1x32xf32>
    %107 = arith.addf %106, %9 : vector<1x32xf32>
    %108 = vector.broadcast %107 : vector<1x32xf32> to vector<8x32xf32>
    %109 = arith.mulf %105, %108 : vector<8x32xf32>
    %110 = vector.broadcast %8 : vector<1x32xf32> to vector<8x32xf32>
    %111 = arith.addf %109, %110 : vector<8x32xf32>
    %c0_34 = arith.constant 0 : index
    %c0_35 = arith.constant 0 : index
    %112 = vector.load %arg8[%c0_34, %c0_35] : memref<32x128xf32, #tpu.memory_space<vmem>>, vector<32x128xf32>
    %cst_36 = arith.constant dense<0.000000e+00> : vector<8x128xf32>
    %113 = tpu.matmul %111, %112, %cst_36 {dimension_numbers = #tpu.dot_dimension_numbers<[1], [0], [0], [1], [0, 0, 1, 1], [], []>} : vector<8x32xf32>, vector<32x128xf32>, vector<8x128xf32> -> vector<8x128xf32>
    %c0_37 = arith.constant 0 : index
    %c0_38 = arith.constant 0 : index
    %114 = vector.load %arg9[%c0_37, %c0_38] : memref<1x128xf32, #tpu.memory_space<vmem>>, vector<1x128xf32>
    %115 = vector.broadcast %114 : vector<1x128xf32> to vector<8x128xf32>
    %116 = arith.addf %113, %115 : vector<8x128xf32>
    %cst_39 = arith.constant 5.000000e-01 : f32
    %117 = vector.broadcast %cst_39 : f32 to vector<8x128xf32>
    %118 = arith.mulf %117, %116 : vector<8x128xf32>
    %cst_40 = arith.constant 4.471500e-02 : f32
    %119 = vector.broadcast %cst_40 : f32 to vector<8x128xf32>
    %120 = arith.mulf %119, %116 : vector<8x128xf32>
    %121 = arith.mulf %120, %116 : vector<8x128xf32>
    %122 = arith.mulf %121, %116 : vector<8x128xf32>
    %123 = arith.addf %116, %122 : vector<8x128xf32>
    %cst_41 = arith.constant 0.797884583 : f32
    %124 = vector.broadcast %cst_41 : f32 to vector<8x128xf32>
    %125 = arith.mulf %124, %123 : vector<8x128xf32>
    %126 = math.tanh %125 : vector<8x128xf32>
    %cst_42 = arith.constant 1.000000e+00 : f32
    %127 = vector.broadcast %cst_42 : f32 to vector<8x128xf32>
    %128 = arith.addf %127, %126 : vector<8x128xf32>
    %129 = arith.mulf %118, %128 : vector<8x128xf32>
    %c0_43 = arith.constant 0 : index
    %c0_44 = arith.constant 0 : index
    %130 = vector.load %arg10[%c0_43, %c0_44] : memref<128x32xf32, #tpu.memory_space<vmem>>, vector<128x32xf32>
    %cst_45 = arith.constant dense<0.000000e+00> : vector<8x32xf32>
    %131 = tpu.matmul %129, %130, %cst_45 {dimension_numbers = #tpu.dot_dimension_numbers<[1], [0], [0], [1], [0, 0, 1, 1], [], []>} : vector<8x128xf32>, vector<128x32xf32>, vector<8x32xf32> -> vector<8x32xf32>
    %c0_46 = arith.constant 0 : index
    %c0_47 = arith.constant 0 : index
    %132 = vector.load %arg11[%c0_46, %c0_47] : memref<1x32xf32, #tpu.memory_space<vmem>>, vector<1x32xf32>
    %133 = vector.broadcast %132 : vector<1x32xf32> to vector<8x32xf32>
    %134 = arith.addf %131, %133 : vector<8x32xf32>
    %135 = vector.broadcast %2 : f32 to vector<1x32xf32>
    %136 = arith.mulf %135, %10 : vector<1x32xf32>
    %137 = vector.broadcast %136 : vector<1x32xf32> to vector<8x32xf32>
    %138 = arith.mulf %137, %134 : vector<8x32xf32>
    %139 = arith.addf %89, %138 : vector<8x32xf32>
    %c0_48 = arith.constant 0 : index
    %c0_49 = arith.constant 0 : index
    %c0_50 = arith.constant 0 : index
    %140 = vector.load %arg12[%c0_48, %c0_49, %c0_50] : memref<1x8x32xf32, #tpu.memory_space<vmem>>, vector<1x8x32xf32>
    %141 = vector.shape_cast %140 : vector<1x8x32xf32> to vector<8x32xf32>
    %142 = vector.shape_cast %139 : vector<8x32xf32> to vector<1x8x32xf32>
    tpu.vector_store %arg12[%c0_48, %c0_49, %c0_50], %142 {strides = array<i32>} : memref<1x8x32xf32, #tpu.memory_space<vmem>>, vector<1x8x32xf32>,
    return
  }
  func.func @transform_0(%arg0: i32) -> i32 {
    %c0_i32 = arith.constant 0 : i32
    %c0_i32_0 = arith.constant 0 : i32
    return %c0_i32 : i32
  }
  func.func @transform_1(%arg0: i32) -> (i32, i32, i32) {
    %c0_i32 = arith.constant 0 : i32
    %c0_i32_0 = arith.constant 0 : i32
    %c0_i32_1 = arith.constant 0 : i32
    return %arg0, %c0_i32, %c0_i32_0 : i32, i32, i32
  }
  func.func @transform_2(%arg0: i32) -> (i32, i32, i32) {
    %c0_i32 = arith.constant 0 : i32
    %c0_i32_0 = arith.constant 0 : i32
    %c0_i32_1 = arith.constant 0 : i32
    return %arg0, %c0_i32, %c0_i32_0 : i32, i32, i32
  }
  func.func @transform_3(%arg0: i32) -> (i32, i32) {
    %c0_i32 = arith.constant 0 : i32
    %c0_i32_0 = arith.constant 0 : i32
    %c0_i32_1 = arith.constant 0 : i32
    return %c0_i32, %c0_i32_0 : i32, i32
  }
  func.func @transform_4(%arg0: i32) -> (i32, i32) {
    %c0_i32 = arith.constant 0 : i32
    %c0_i32_0 = arith.constant 0 : i32
    %c0_i32_1 = arith.constant 0 : i32
    return %c0_i32, %c0_i32_0 : i32, i32
  }
  func.func @transform_5(%arg0: i32) -> (i32, i32, i32) {
    %c0_i32 = arith.constant 0 : i32
    %c0_i32_0 = arith.constant 0 : i32
    %c0_i32_1 = arith.constant 0 : i32
    %c0_i32_2 = arith.constant 0 : i32
    return %c0_i32, %c0_i32_0, %c0_i32_1 : i32, i32, i32
  }
  func.func @transform_6(%arg0: i32) -> (i32, i32) {
    %c0_i32 = arith.constant 0 : i32
    %c0_i32_0 = arith.constant 0 : i32
    %c0_i32_1 = arith.constant 0 : i32
    return %c0_i32, %c0_i32_0 : i32, i32
  }
  func.func @transform_7(%arg0: i32) -> (i32, i32) {
    %c0_i32 = arith.constant 0 : i32
    %c0_i32_0 = arith.constant 0 : i32
    %c0_i32_1 = arith.constant 0 : i32
    return %c0_i32, %c0_i32_0 : i32, i32
  }
  func.func @transform_8(%arg0: i32) -> (i32, i32) {
    %c0_i32 = arith.constant 0 : i32
    %c0_i32_0 = arith.constant 0 : i32
    %c0_i32_1 = arith.constant 0 : i32
    return %c0_i32, %c0_i32_0 : i32, i32
  }
  func.func @transform_9(%arg0: i32) -> (i32, i32) {
    %c0_i32 = arith.constant 0 : i32
    %c0_i32_0 = arith.constant 0 : i32
    %c0_i32_1 = arith.constant 0 : i32
    return %c0_i32, %c0_i32_0 : i32, i32
  }
  func.func @transform_10(%arg0: i32) -> (i32, i32) {
    %c0_i32 = arith.constant 0 : i32
    %c0_i32_0 = arith.constant 0 : i32
    %c0_i32_1 = arith.constant 0 : i32
    return %c0_i32, %c0_i32_0 : i32, i32
  }
  func.func @transform_11(%arg0: i32) -> (i32, i32, i32) {
    %c0_i32 = arith.constant 0 : i32
    %c0_i32_0 = arith.constant 0 : i32
    %c0_i32_1 = arith.constant 0 : i32
    return %arg0, %c0_i32, %c0_i32_0 : i32, i32, i32
  }
}

</mosaic_0001>

<bundles_post_ra>
// kernel: tpu_custom_call.1
= control target key start
LH: loop header
LB: loop body
LE: loop exit
PB: predicated region body
PF: predicated region fallthrough
CT: control target
= control target key end

     0   :  { %s2585_s0 = inlined_call_operand.<no memory space> [shape: f32[1], index: 0, kind: input, shape index: {}]   ;;  %s2586_s1 = inlined_call_operand.vmem [shape: f32[2,8,32], index: 1, kind: input, shape index: {}]   ;;  %s2587_s2 = inlined_call_operand.vmem [shape: f32[2,6,32], index: 2, kind: input, shape index: {}]   ;;  %s2588_s3 = inlined_call_operand.vmem [shape: f32[32,96], index: 3, kind: input, shape index: {}]   ;;  %s2589_s4 = inlined_call_operand.vmem [shape: f32[1,96], index: 4, kind: input, shape index: {}]   ;;  %s2590_s5 = inlined_call_operand.vmem [shape: f32[4,8,32], index: 5, kind: input, shape index: {}]   ;;  %s2591_s6 = inlined_call_operand.vmem [shape: f32[1,32], index: 6, kind: input, shape index: {}]   ;;  %s2592_s7 = inlined_call_operand.vmem [shape: f32[32,128], index: 7, kind: input, shape index: {}]   ;;  %s2593_s8 = inlined_call_operand.vmem [shape: f32[1,128], index: 8, kind: input, shape index: {}]   ;;  %s2594_s9 = inlined_call_operand.vmem [shape: f32[128,32], index: 9, kind: input, shape index: {}]   ;;  %s2595_s10 = inlined_call_operand.vmem [shape: f32[1,32], index: 10, kind: input, shape index: {}]   ;;  %s2596_s11 = inlined_call_operand.hbm [shape: f32[2,8,32], index: 11, kind: output, shape index: {}]  }
   0x1   :  { %16 = sst [smem:[#allocation2]] %s2585_s0 }
   0x2   :  { %17 = vsyncpa [#allocation4], 0 }
   0x3   :  { %19 = vsyncpa [#allocation4 + $0x1], 0  ;;  %s2239_s19 = smov 0   ;;  %s2241_s20 = smov 0  }
   0x4   :  { %s2243_s21 = smov 0   ;;  %s2245_s22 = smov 0  }
   0x5 LB: > { %s2260_s0 = sadd.s32 4294967295, %s2165_s22   ;;  %s1797_s23 = sadd.s32 4294967294, %s2165_s22   ;;  %s2165_s22 = sphi %s2245_s22, %s2602_s22   ;;  %s2161_s21 = sphi %s2243_s21, %s2601_s21   ;;  %s2157_s20 = sphi %s2241_s20, %s2600_s20   ;;  %s2153_s19 = sphi %s2239_s19, %s2599_s19  }
   0x6   : > { %s2264_s24 = sadd.s32 1, %s2165_s22   ;;  %s273_s25 = sadd.s32 1, %s2161_s21 }
   0x7   : > { %s270_s26 = ssub.s32 %s2165_s22, %s2264_s24  ;;  %p283_p0 = scmp.ne.s32.totalorder %s2161_s21, %s2157_s20 }
   0x8   : > { %p271_p1 = scmp.eq.s32.totalorder %s270_s26, 0  ;;  %p284_p2 = scmp.eq.s32.totalorder %s2260_s0, 1 }
   0x9   : > { %p289_p3 = scmp.ne.s32.totalorder %s2157_s20, %s2153_s19  ;;  %p290_p4 = scmp.eq.s32.totalorder %s1797_s23, 1 }
   0xa   : > { %s2275_s27 = scalar_select %p271_p1, %s2161_s21, %s273_s25  }
   0xb   : > { %p2277_p5 = por %p284_p2, %p283_p0  ;;  %p2281_p6 = por %p290_p4, %p289_p3 }
   0xc   : > { %p1800_p7 = scmp.ge.s32.totalorder %s2165_s22, 1  ;;  %p349_p8 = scmp.lt.s32.totalorder %s2165_s22, 3 }
   0xe   : > { %p350_p9 = pnand %p1800_p7, %p349_p8 }
   0xf   : > { %p392_p10 = scmp.lt.s32.totalorder (!%p350_p9), %s2260_s0, 1  ;;  %vm403_vm0 = vcmask (!%p350_p9), 261120   ;;  %v429_v7 = vld [vmem:[%s2588_s3] sm:$0xff] (!%p350_p9)  ;;  %v430_v8 = vld [vmem:[%s2588_s3 + $0x8] sm:$0xff] (!%p350_p9)  ;;  %v431_v9 = vld [vmem:[%s2588_s3 + $0x10] sm:$0xff] (!%p350_p9)  ;;  %v2167_v10 = vmov (!%p350_p9), 0.0|0.0   ;;  %v419_v17 = vlaneseq (!%p350_p9) }
  0x10   : > { %353 = sbr.rel (%p350_p9) target bundleno = 2541 (0x9ed), region = 64  ;;  %1998 = vmatprep.subr.bf16.mxu0 (!%p350_p9), %v2167_v10  ;;  %v1999_v11 = vpack.c.bf16 (!%p350_p9), %v430_v8, %v429_v7  ;;  %v432_v12 = vld [vmem:[%s2588_s3 + $0x18] sm:$0xff] (!%p350_p9)  ;;  %vm2168_vm1 = vmmov (!%p350_p9), 0   ;;  %v2169_v13 = vmov (!%p350_p9), 0.0   ;;  %v1804_v30 = vld [vmem:[%s2589_s4] ss:$0 sm:$0xff] (!%p350_p9) }
  0x11   : > { %1889 = vmatprep.mubr.msk.f32.mxu0 (!%p350_p9), %vm2168_vm1, %v2169_v13  ;;  %1917 = vmatprep.subr.mxu1 (!%p350_p9), %v2169_v13  ;;  %v2002_v14 = vpack.c.bf16 (!%p350_p9), %v432_v12, %v431_v9  ;;  %v2328_v19 = vshrl.u32 (!%p350_p9), %v419_v17, 7  ;;  %s2170_s18 = smov (!%p350_p9), 104   ;;  %s2171_s23 = smov (!%p350_p9), 120   ;;  %vm522_vm2 = vcmask (!%p350_p9), 64512  }
  0x12   : > { %1919 = vmatprep.mubr.msk.f32.mxu1 (!%p350_p9), %vm2168_vm1, %v2169_v13  ;;  %2000 = vmatpush3.bf16.msra.mxu0 (!%p350_p9), %v1999_v11  ;;  %s2172_s25 = smov (!%p350_p9), 112   ;;  %s2173_s26 = smov (!%p350_p9), 96  }
  0x13   : > { %2001 = vmatprep.subr.bf16.mxu0 (!%p350_p9), %v2167_v10  ;;  %v421_v22 = vsub.s32 (!%p350_p9), 1, %v2328_v19  ;;  %v426_v23 = vsub.s32 (!%p350_p9), 0, %v2328_v19  ;;  %s2174_s13 = smov (!%p350_p9), 64   ;;  %s1827_s16 = sshll.u32 (!%p350_p9), %s2260_s0, 7 }
  0x16   : > { %2003 = vmatpush3.bf16.msra.mxu0 (!%p350_p9), %v2002_v14 }
  0x17   : > { %s2289_s30 = scalar_select %p392_p10, %s2260_s0, 1  ;;  %1892 = vmatprep.subr.mxu0 %v2169_v13 }
  0x18   : > { %s2175_s0 = smov [#allocation3]  }
  0x19   : > { %s1802_s12 = sshll.u32 %s2289_s30, 3 }
  0x1a   : > { %s395_s15 = scalar_lea.vmem %s2586_s1, %s1802_s12  ;;  %s399_s17 = scalar_lea.vmem %s2587_s2, %s1802_s12 }
  0x1b   : > { %v2297_v0 = vld [vmem:[%s395_s15] sm:$0xff] }
  0x1c   : > { %v404_v1 = vsel %vm403_vm0, %v2297_v0, 0.0  ;;  %v2330_v20 = vld [vmem:[%s399_s17] sm:$0x3f] }
  0x1d   : > { %405 = vadd.xlane.f32.xlu0 %v404_v1  ;;  %v2333_v21 = vadd.f32 1.0, %v2330_v20  ;;  %v427_v26 = vrot.slane %v2330_v20, %v426_v23 }
  0x1f   : > { %v422_v24 = vrot.slane %v2333_v21, %v421_v22 }
  0xaa   : > { %v406_v2 = vpop.xlane.xlu0 %405 }
  0xab   : > { %v408_v3 = vmul.f32 0.03125, %v406_v2 }
  0xad   : > { %v409_v4 = vsub.f32 %v2297_v0, %v408_v3 }
  0xaf   : > { %v410_v5 = vmul.f32 %v409_v4, %v409_v4 }
  0xb1   : > { %v411_v6 = vsel %vm403_vm0, %v410_v5, 0.0 }
  0xb2   : > { %412 = vadd.xlane.f32.xlu0 %v411_v6 }
 0x13f   : > { %v413_v15 = vpop.xlane.xlu0 %412 }
 0x140   : > { %v414_v16 = vmul.f32 0.03125, %v413_v15 }
 0x142   : > { %v415_v18 = vadd.f32 1e-06, %v414_v16 }
 0x144   : > { %2081 = vrsqrt.f32 %v415_v18 }
 0x14e   : > { %v2082_v25 = vpop.eup %2081 }
 0x14f   : > { %v417_v27 = vmul.f32 %v2082_v25, %v409_v4 }
 0x151   : > { %v423_v28 = vmul.f32 %v422_v24, %v417_v27 }
 0x153   : > { %v428_v29 = vadd.f32 %v427_v26, %v423_v28 }
 0x155   : > { %1890 = vmatmul.mubr.msk.f32.vlgmr.msra.gmra.mrb[0].mxu0 %vm403_vm0, %v428_v29 }
 0x156   : > { %1894 = vmatprep.mubr.msk.f32.mxu0 %vm2168_vm1, %v2169_v13 }
 0x228   : > { %v509_v31 = vpop.f32.mrb[0].mxu0 }
 0x229   : > { %v510_v32 = vadd.f32 %v1804_v30, %v509_v31  ;;  %v1891_v33 = vpop.f32.mrb[1].mxu0 }
 0x22a   : > { %v1177_v33 = vld [vmem:[%s2590_s5] sm:$0xff] }
 0x22b   : > { %518 = vrot.lane.b32.xlu0 %v510_v32, %s2170_s18  ;;  %514 = vrot.lane.b32.xlu1 %v510_v32, %s2171_s23  ;;  %s2542_s23 = scalar_lea.hbm %s2596_s11, %s1827_s16 }
 0x22f   : > { %516 = vrot.lane.b32.xlu1 %v510_v32, %s2172_s25  ;;  %s401_s25 = sld [smem:[#allocation2]] }
 0x233   : > { %520 = vrot.lane.b32.xlu1 %v510_v32, %s2173_s26 }
 0x29d   : > { %v2345_v34 = vpop.permute.xlu1 %514  ;;  %v2351_v36 = vpop.permute.xlu0 %518 }
 0x29e   : > { %597 = vrot.lane.b32.xlu1 %v2345_v34, %s2173_s26 }
 0x2a1   : > { %v2348_v35 = vpop.permute.xlu1 %516 }
 0x2a2   : > { %673 = vrot.lane.b32.xlu1 %v2348_v35, %s2173_s26 }
 0x2a5   : > { %v521_v37 = vpop.permute.xlu1 %520 }
 0x2a6   : > { %749 = vrot.lane.b32.xlu1 %v2351_v36, %s2173_s26  ;;  %1893 = vmatpush3.xpose.msk.msra.mxu0 %vm522_vm2, %v521_v37  ;;  %v1179_v37 = vld [vmem:[%s2590_s5 + $0x10] sm:$0xff]  ;;  %s389_s26 = sand.u32 1, %s2157_s20  }
 0x2a7   : > { %1897 = vmatprep.subr.mxu0 %v2169_v13 }
 0x2a9   : > { %1895 = vmatmul.mubr.msk.f32.vlgmr.msra.gmra.mrb[2].mxu0 %vm522_vm2, %v510_v32 }
 0x2aa   : > { %1899 = vmatprep.mubr.msk.f32.mxu0 %vm2168_vm1, %v2169_v13 }
 0x310   : > { %v598_v38 = vpop.permute.xlu1 %597 }
 0x311   : > { %1898 = vmatpush3.xpose.msk.msra.mxu0 %vm522_vm2, %v598_v38 }
 0x312   : > { %1902 = vmatprep.subr.mxu0 %v2169_v13 }
 0x314   : > { %1900 = vmatmul.mubr.msk.f32.vlgmr.msra.gmra.mrb[4].mxu0 %vm522_vm2, %v2345_v34  ;;  %v674_v39 = vpop.permute.xlu1 %673 }
 0x315   : > { %1903 = vmatpush3.xpose.msk.msra.mxu0 %vm522_vm2, %v674_v39  ;;  %1904 = vmatprep.mubr.msk.f32.mxu0 %vm2168_vm1, %v2169_v13 }
 0x316   : > { %1907 = vmatprep.subr.mxu0 %v2169_v13 }
 0x318   : > { %1905 = vmatmul.mubr.msk.f32.vlgmr.msra.gmra.mrb[6].mxu0 %vm522_vm2, %v2348_v35  ;;  %v750_v40 = vpop.permute.xlu1 %749 }
 0x319   : > { %1908 = vmatpush3.xpose.msk.msra.mxu0 %vm522_vm2, %v750_v40  ;;  %1909 = vmatprep.mubr.msk.f32.mxu0 %vm2168_vm1, %v2169_v13  ;;  %v1180_v40 = vld [vmem:[%s2590_s5 + $0x18] sm:$0xff] }
 0x31a   : > { %1912 = vmatprep.subr.mxu0 %v2169_v13 }
 0x31c   : > { %1910 = vmatmul.mubr.msk.f32.vlgmr.msra.gmra.mrb[8].mxu0 %vm522_vm2, %v2351_v36 }
 0x31d   : > { %1914 = vmatprep.mubr.msk.f32.mxu0 %vm2168_vm1, %v2169_v13 }
 0x37c   : > { %v593_v41 = vpop.f32.mrb[2].mxu0 }
 0x37d   : > { %v825_v42 = vmul.f32 0.35355338, %v593_v41  ;;  %v1896_v43 = vpop.f32.mrb[3].mxu0 }
 0x37f   : > { %v829_v44 = vsel %vm522_vm2, %v825_v42, -inf }
 0x380   : > { %830 = vmax.xlane.f32.xlu1 %v829_v44 }
 0x3e7   : > { %v669_v45 = vpop.f32.mrb[4].mxu0 }
 0x3e8   : > { %v826_v46 = vmul.f32 0.35355338, %v669_v45  ;;  %v1901_v47 = vpop.f32.mrb[5].mxu0 }
 0x3ea   : > { %v832_v48 = vsel %vm522_vm2, %v826_v46, -inf }
 0x3eb   : > { %833 = vmax.xlane.f32.xlu0 %v832_v48  ;;  %v745_v49 = vpop.f32.mrb[6].mxu0 }
 0x3ec   : > { %v827_v50 = vmul.f32 0.35355338, %v745_v49  ;;  %v1906_v51 = vpop.f32.mrb[7].mxu0 }
 0x3ee   : > { %v835_v52 = vsel %vm522_vm2, %v827_v50, -inf }
 0x3ef   : > { %836 = vmax.xlane.f32.xlu1 %v835_v52  ;;  %v821_v53 = vpop.f32.mrb[8].mxu0 }
 0x3f0   : > { %v828_v54 = vmul.f32 0.35355338, %v821_v53  ;;  %v1911_v55 = vpop.f32.mrb[9].mxu0 }
 0x3f2   : > { %v838_v56 = vsel %vm522_vm2, %v828_v54, -inf }
 0x3f3   : > { %839 = vmax.xlane.f32.xlu0 %v838_v56 }
 0x400   : > { %873 = vrot.lane.b32.xlu1 %v510_v32, %s2174_s13 }
 0x40d   : > { %v831_v57 = vpop.xlane.xlu1 %830 }
 0x40e   : > { %v841_v58 = vsub.f32 %v825_v42, %v831_v57 }
 0x410   : > { %v845_v59 = vmul.f32 1.442695, %v841_v58 }
 0x412   : > { %2083 = vpow2.f32 %v845_v59 }
 0x41c   : > { %v2084_v60 = vpop.eup %2083 }
 0x41d   : > { %v853_v61 = vsel %vm522_vm2, %v2084_v60, 0.0 }
 0x424   : > { %854 = vadd.xlane.f32.xlu1 %v853_v61 }
 0x478   : > { %v834_v62 = vpop.xlane.xlu0 %833 }
 0x479   : > { %v842_v63 = vsub.f32 %v826_v46, %v834_v62  ;;  %v1822_v62 = vld [vmem:[%s2591_s6] ss:$0 sm:$0xff] }
 0x47b   : > { %v847_v1 = vmul.f32 1.442695, %v842_v63 }
 0x47c   : > { %v837_v2 = vpop.xlane.xlu1 %836 }
 0x47d   : > { %2085 = vpow2.f32 %v847_v1  ;;  %v843_v3 = vsub.f32 %v827_v50, %v837_v2 }
 0x47f   : > { %v849_v4 = vmul.f32 1.442695, %v843_v3 }
 0x480   : > { %v874_v5 = vpop.permute.xlu1 %873  ;;  %v840_v6 = vpop.xlane.xlu0 %839 }
 0x481   : > { %2087 = vpow2.f32 %v849_v4  ;;  %v844_v7 = vsub.f32 %v828_v54, %v840_v6  ;;  %1913 = vmatpush3.msra.mxu0 %v874_v5  ;;  %v1488_v54 = vstv %s401_s25  ;;  %s1713_s25 = scalar_lea.sflag [#allocation4], %s389_s26 }
 0x482   : > { %1922 = vmatprep.subr.mxu0 %v2169_v13  ;;  %v2440_v58 = vmul.f32 %v1488_v54, %v2330_v20 }
 0x483   : > { %v851_v8 = vmul.f32 1.442695, %v844_v7 }
 0x485   : > { %2089 = vpow2.f32 %v851_v8 }
 0x487   : > { %v2086_v9 = vpop.eup %2085 }
 0x488   : > { %v856_v11 = vsel %vm522_vm2, %v2086_v9, 0.0 }
 0x489   : > { %857 = vadd.xlane.f32.xlu0 %v856_v11 }
 0x48b   : > { %v2088_v12 = vpop.eup %2087 }
 0x48c   : > { %v859_v14 = vsel %vm522_vm2, %v2088_v12, 0.0 }
 0x48d   : > { %860 = vadd.xlane.f32.xlu1 %v859_v14  ;;  %v1519_v14 = vld [vmem:[%s2592_s7] sm:$0xff] }
 0x48f   : > { %v2090_v15 = vpop.eup %2089 }
 0x490   : > { %v862_v16 = vsel %vm522_vm2, %v2090_v15, 0.0 }
 0x491   : > { %863 = vadd.xlane.f32.xlu0 %v862_v16  ;;  %v1521_v16 = vld [vmem:[%s2592_s7 + $0x10] sm:$0xff] }
 0x49e   : > { %1025 = vrot.lane.b32.xlu1 %v2348_v35, %s2174_s13 }
 0x4a2   : > { %1101 = vrot.lane.b32.xlu1 %v2351_v36, %s2174_s13  ;;  %v1178_v36 = vld [vmem:[%s2590_s5 + $0x8] sm:$0xff] }
 0x4a7   : > { %949 = vrot.lane.b32.xlu0 %v2345_v34, %s2174_s13  ;;  %s1801_s13 = sshll.u32 %s389_s26, 3 }
 0x4a8   : > { %s391_s17 = scalar_lea.vmem [#allocation3], %s1801_s13  ;;  %s2107_s13 = sshll.u32 %s2175_s0, 4  ;;  %s2108_s13 = int_to_ptr.vmem [resolvable:$false] %s2107_s13 }
 0x4a9   : > { %s1726_s30 = sshll.u32 %s391_s17, 4  ;;  %s2109_s15 = scalar_lea.vmem %s2108_s13, 256  ;;  %s2544_s30 = int_to_ptr.vmem [resolvable:$true] %s1726_s30 }
 0x4aa   : > { %s2103_s14 = scalar_lea.vmem %s2544_s30, 128  ;;  %p2110_p0 = scmp.lt.s32.totalorder %s2544_s30, %s2108_s13 }
 0x4ab   : > { %p2104_p11 = scmp.ne.s32.totalorder %s2544_s30, %s2103_s14  ;;  %p2111_p1 = scmp.lt.s32.totalorder %s2109_s15, %s2103_s14 }
 0x4ad   : > { %p2105_p12 = pnand %p2104_p11, %p2277_p5  ;;  %p2112_p2 = por %p2111_p1, %p2110_p0 }
 0x4af   : > { %p2106_p13 = pneg %p2105_p12 }
 0x4b1   : > { %v855_v17 = vpop.xlane.xlu1 %854  ;;  %p2113_p3 = pnand %p2112_p2, %p2106_p13 }
 0x4b2   : > { %2091 = vrcp.f32 %v855_v17  ;;  %v1522_v17 = vld [vmem:[%s2592_s7 + $0x18] sm:$0xff] }
 0x4bc   : > { %v2092_v18 = vpop.eup %2091 }
 0x4bd   : > { %v869_v22 = vmul.f32 %v2092_v18, %v2084_v60  ;;  %v2008_v18 = vpack.c.bf16 %v1522_v17, %v1521_v16 }
 0x4bf   : > { %1915 = vmatmul.mubr.msk.f32.vlgmr.msra.gmra.mrb[10].mxu0 %vm522_vm2, %v869_v22  ;;  %v1612_v22 = vld [vmem:[%s2594_s9] sm:$0xff] }
 0x4c0   : > { %1924 = vmatprep.mubr.msk.f32.mxu0 %vm2168_vm1, %v2169_v13 }
 0x516   : > { %v858_v23 = vpop.xlane.xlu0 %857 }
 0x517   : > { %2093 = vrcp.f32 %v858_v23  ;;  %v1613_v23 = vld [vmem:[%s2594_s9 + $0x8] sm:$0xff] }
 0x51a   : > { %v861_v24 = vpop.xlane.xlu1 %860 }
 0x51b   : > { %2095 = vrcp.f32 %v861_v24  ;;  %v2011_v24 = vpack.c.bf16 %v1613_v23, %v1612_v22 }
 0x51e   : > { %v1026_v25 = vpop.permute.xlu1 %1025  ;;  %v864_v26 = vpop.xlane.xlu0 %863 }
 0x51f   : > { %2097 = vrcp.f32 %v864_v26  ;;  %1923 = vmatpush3.msra.mxu0 %v1026_v25 }
 0x520   : > { %1932 = vmatprep.subr.mxu0 %v2169_v13 }
 0x521   : > { %v2094_v27 = vpop.eup %2093 }
 0x522   : > { %v950_v28 = vpop.permute.xlu0 %949  ;;  %v870_v29 = vmul.f32 %v2094_v27, %v2086_v9  ;;  %v1102_v30 = vpop.permute.xlu1 %1101 }
 0x523   : > { %1918 = vmatpush3.msra.mxu1 %v950_v28  ;;  %v1511_v28 = vsub.s32 4, %v2328_v19 }
 0x524   : > { %1920 = vmatmul.mubr.msk.f32.vlgmr.msra.gmra.mrb[0].mxu1 %vm522_vm2, %v870_v29  ;;  %1927 = vmatprep.subr.mxu1 %v2169_v13  ;;  %v1516_v29 = vsub.s32 3, %v2328_v19 }
 0x525   : > { %v2096_v31 = vpop.eup %2095  ;;  %1928 = vmatpush3.msra.mxu1 %v1102_v30  ;;  %1929 = vmatprep.mubr.msk.f32.mxu1 %vm2168_vm1, %v2169_v13  ;;  %v1512_v30 = vrot.slane %v2333_v21, %v1511_v28  ;;  %v1617_v21 = vld [vmem:[%s2594_s9 + $0x28] sm:$0xff] }
 0x526   : > { %v871_v32 = vmul.f32 %v2096_v31, %v2088_v12  ;;  %1937 = vmatprep.subr.mxu1 %v2169_v13 }
 0x528   : > { %1925 = vmatmul.mubr.msk.f32.vlgmr.msra.gmra.mrb[12].mxu0 %vm522_vm2, %v871_v32  ;;  %v1517_v32 = vrot.slane %v2330_v20, %v1516_v29  ;;  %v1616_v20 = vld [vmem:[%s2594_s9 + $0x20] sm:$0xff] }
 0x529   : > { %v2098_v34 = vpop.eup %2097  ;;  %1933 = vmatpush3.msra.mxu0 %v1177_v33  ;;  %1934 = vmatprep.mubr.msk.f32.mxu0 %vm2168_vm1, %v2169_v13 }
 0x52a   : > { %v872_v35 = vmul.f32 %v2098_v34, %v2090_v15  ;;  %1942 = vmatprep.subr.mxu0 %v2169_v13 }
 0x52c   : > { %1930 = vmatmul.mubr.msk.f32.vlgmr.msra.gmra.mrb[2].mxu1 %vm522_vm2, %v872_v35 }
 0x52d   : > { %1939 = vmatprep.mubr.msk.f32.mxu1 %vm2168_vm1, %v2169_v13  ;;  %1938 = vmatpush3.msra.mxu1 %v1178_v36  ;;  %v1614_v36 = vld [vmem:[%s2594_s9 + $0x10] sm:$0xff] }
 0x52e   : > { %1947 = vmatprep.subr.mxu1 %v2169_v13 }
 0x592   : > { %v945_v38 = vpop.f32.mrb[10].mxu0 }
 0x593   : > { %v1916_v39 = vpop.f32.mrb[11].mxu0  ;;  %1935 = vmatmul.mubr.msk.f32.vlgmr.msra.gmra.mrb[14].mxu0 %vm522_vm2, %v945_v38 }
 0x594   : > { %1943 = vmatpush3.msra.mxu0 %v1179_v37  ;;  %1944 = vmatprep.mubr.msk.f32.mxu0 %vm2168_vm1, %v2169_v13  ;;  %v1615_v37 = vld [vmem:[%s2594_s9 + $0x18] sm:$0xff]  ;;  %v2017_v39 = vpack.c.bf16 %v1617_v21, %v1616_v20 }
 0x595   : > { %2004 = vmatprep.subr.bf16.mxu0 %v2167_v10  ;;  %v2014_v38 = vpack.c.bf16 %v1615_v37, %v1614_v36 }
 0x5f7   : > { %v1021_v41 = vpop.f32.mrb[0].mxu1 }
 0x5f8   : > { %v1921_v42 = vpop.f32.mrb[1].mxu1  ;;  %1940 = vmatmul.mubr.msk.f32.vlgmr.msra.gmra.mrb[4].mxu1 %vm522_vm2, %v1021_v41  ;;  %v1619_v41 = vld [vmem:[%s2594_s9 + $0x38] sm:$0xff] }
 0x5f9   : > { %1948 = vmatpush3.msra.mxu1 %v1180_v40  ;;  %1949 = vmatprep.mubr.msk.f32.mxu1 %vm2168_vm1, %v2169_v13  ;;  %v1618_v40 = vld [vmem:[%s2594_s9 + $0x30] sm:$0xff] }
 0x5fa   : > { %2010 = vmatprep.subr.bf16.mxu1 %v2167_v10  ;;  %v2020_v42 = vpack.c.bf16 %v1619_v41, %v1618_v40 }
 0x5fb   : > { %v1097_v43 = vpop.f32.mrb[12].mxu0 }
 0x5fc   : > { %v1926_v44 = vpop.f32.mrb[13].mxu0  ;;  %1945 = vmatmul.mubr.msk.f32.vlgmr.msra.gmra.mrb[16].mxu0 %vm522_vm2, %v1097_v43  ;;  %v1620_v43 = vld [vmem:[%s2594_s9 + $0x40] sm:$0xff] }
 0x5fd   : > { %1960 = vmatprep.mubr.msk.f32.mxu0 %vm2168_vm1, %v2169_v13  ;;  %v1621_v44 = vld [vmem:[%s2594_s9 + $0x48] sm:$0xff] }
 0x5ff   : > { %v1173_v45 = vpop.f32.mrb[2].mxu1 }
 0x600   : > { %v1931_v46 = vpop.f32.mrb[3].mxu1  ;;  %1950 = vmatmul.mubr.msk.f32.vlgmr.msra.gmra.mrb[6].mxu1 %vm522_vm2, %v1173_v45  ;;  %v2023_v45 = vpack.c.bf16 %v1621_v44, %v1620_v43 }
 0x601   : > { %1995 = vmatprep.mubr.msk.f32.mxu1 %vm2168_vm1, %v2169_v13  ;;  %v1492_v13 = vsub.s32 2, %v2328_v19  ;;  %2012 = vmatpush3.bf16.msra.mxu1 %v2011_v24  ;;  %v1622_v46 = vld [vmem:[%s2594_s9 + $0x50] sm:$0xff] }
 0x602   : > { %2013 = vmatprep.subr.bf16.mxu1 %v2167_v10 }
 0x603   : > { %v1493_v2 = vrot.slane %v2440_v58, %v1492_v13 }
 0x605   : > { %2015 = vmatpush3.bf16.msra.mxu1 %v2014_v38 }
 0x606   : > { %2016 = vmatprep.subr.bf16.mxu1 %v2167_v10 }
 0x609   : > { %2018 = vmatpush3.bf16.msra.mxu1 %v2017_v39 }
 0x60a   : > { %2019 = vmatprep.subr.bf16.mxu1 %v2167_v10 }
 0x60d   : > { %2021 = vmatpush3.bf16.msra.mxu1 %v2020_v42 }
 0x60e   : > { %2022 = vmatprep.subr.bf16.mxu1 %v2167_v10 }
 0x611   : > { %2024 = vmatpush3.bf16.msra.mxu1 %v2023_v45 }
 0x612   : > { %2025 = vmatprep.subr.bf16.mxu1 %v2167_v10 }
 0x666   : > { %v1250_v47 = vpop.f32.mrb[14].mxu0 }
 0x667   : > { %v1936_v48 = vpop.f32.mrb[15].mxu0  ;;  %v1473_v50 = vsel %vm403_vm0, %v1250_v47, 0.0  ;;  %v1623_v47 = vld [vmem:[%s2594_s9 + $0x58] sm:$0xff] }
 0x668   : > { %v2026_v48 = vpack.c.bf16 %v1623_v47, %v1622_v46 }
 0x66a   : > { %2027 = vmatpush3.bf16.msra.mxu1 %v2026_v48 }
 0x66b   : > { %2028 = vmatprep.subr.bf16.mxu1 %v2167_v10 }
 0x6cb   : > { %v1323_v49 = vpop.f32.mrb[4].mxu1 }
 0x6cc   : > { %v1474_v51 = vsel %vm403_vm0, %v1323_v49, 0.0  ;;  %v1941_v52 = vpop.f32.mrb[5].mxu1  ;;  %v1624_v49 = vld [vmem:[%s2594_s9 + $0x60] sm:$0xff] }
 0x6cd   : > { %v1475_v53 = vadd.f32 %v1474_v51, %v1473_v50  ;;  %v1625_v50 = vld [vmem:[%s2594_s9 + $0x68] sm:$0xff]  ;;  %v1626_v52 = vld [vmem:[%s2594_s9 + $0x70] sm:$0xff] }
 0x6ce   : > { %v2029_v51 = vpack.c.bf16 %v1625_v50, %v1624_v49 }
 0x6cf   : > { %v1396_v55 = vpop.f32.mrb[16].mxu0 }
 0x6d0   : > { %v1476_v56 = vsel %vm403_vm0, %v1396_v55, 0.0  ;;  %v1946_v57 = vpop.f32.mrb[17].mxu0  ;;  %2030 = vmatpush3.bf16.msra.mxu1 %v2029_v51  ;;  %v1823_v55 = vld [vmem:[%s2593_s8] ss:$0 sm:$0xff] }
 0x6d1   : > { %v1477_v59 = vadd.f32 %v1476_v56, %v1475_v53  ;;  %v1627_v53 = vld [vmem:[%s2594_s9 + $0x78] sm:$0xff]  ;;  %2031 = vmatprep.subr.bf16.mxu1 %v2167_v10 }
 0x6d2   : > { %v2032_v54 = vpack.c.bf16 %v1627_v53, %v1626_v52 }
 0x6d3   : > { %v1469_v60 = vpop.f32.mrb[6].mxu1 }
 0x6d4   : > { %v1478_v61 = vsel %vm403_vm0, %v1469_v60, 0.0  ;;  %v1951_v63 = vpop.f32.mrb[7].mxu1  ;;  %2033 = vmatpush3.bf16.msra.mxu1 %v2032_v54 }
 0x6d5   : > { %v1479_v1 = vadd.f32 %v1478_v61, %v1477_v59 }
 0x6d7   : > { %v1487_v3 = vadd.f32 %v1822_v62, %v1479_v1 }
 0x6d9   : > { %v1494_v4 = vmul.f32 %v1493_v2, %v1487_v3 }
 0x6db   : > { %v2449_v5 = vadd.f32 %v1494_v4, %v2297_v0  ;;  %v1520_v0 = vld [vmem:[%s2592_s7 + $0x8] sm:$0xff]  ;;  %v1707_v4 = vsub.s32 5, %v2328_v19 }
 0x6dc   : > { %v2005_v15 = vpack.c.bf16 %v1520_v0, %v1519_v14 }
 0x6dd   : > { %v1496_v6 = vsel %vm403_vm0, %v2449_v5, 0.0 }
 0x6de   : > { %1497 = vadd.xlane.f32.xlu0 %v1496_v6  ;;  %2006 = vmatpush3.bf16.msra.mxu0 %v2005_v15  ;;  %v1825_v6 = vld [vmem:[%s2595_s10] ss:$0 sm:$0xff] }
 0x6df   : > { %2007 = vmatprep.subr.bf16.mxu0 %v2167_v10 }
 0x6e2   : > { %2009 = vmatpush3.bf16.msra.mxu0 %v2008_v18 }
 0x76b   : > { %v1498_v7 = vpop.xlane.xlu0 %1497 }
 0x76c   : > { %v1499_v8 = vmul.f32 0.03125, %v1498_v7  ;;  %v1708_v7 = vrot.slane %v2440_v58, %v1707_v4 }
 0x76e   : > { %v1500_v9 = vsub.f32 %v2449_v5, %v1499_v8 }
 0x770   : > { %v1501_v11 = vmul.f32 %v1500_v9, %v1500_v9 }
 0x772   : > { %v1502_v12 = vsel %vm403_vm0, %v1501_v11, 0.0 }
 0x773   : > { %1503 = vadd.xlane.f32.xlu1 %v1502_v12 }
 0x800   : > { %v1504_v25 = vpop.xlane.xlu1 %1503 }
 0x801   : > { %v1505_v26 = vmul.f32 0.03125, %v1504_v25 }
 0x803   : > { %v1506_v27 = vadd.f32 1e-06, %v1505_v26 }
 0x805   : > { %2099 = vrsqrt.f32 %v1506_v27 }
 0x80f   : > { %v2100_v31 = vpop.eup %2099 }
 0x810   : > { %v1508_v33 = vmul.f32 %v2100_v31, %v1500_v9 }
 0x812   : > { %v1513_v34 = vmul.f32 %v1512_v30, %v1508_v33 }
 0x814   : > { %v1518_v35 = vadd.f32 %v1517_v32, %v1513_v34 }
 0x816   : > { %1961 = vmatmul.mubr.msk.f32.vlgmr.msra.gmra.mrb[18].mxu0 %vm403_vm0, %v1518_v35 }
 0x8e9   : > { %v1599_v56 = vpop.f32.mrb[18].mxu0 }
 0x8ea   : > { %v1600_v57 = vadd.f32 %v1823_v55, %v1599_v56  ;;  %v1962_v59 = vpop.f32.mrb[19].mxu0 }
 0x8ec   : > { %v1604_v13 = vmul.f32 0.044715, %v1600_v57  ;;  %v1603_v2 = vmul.f32 0.5, %v1600_v57 }
 0x8ee   : > { %v1605_v60 = vmul.f32 %v1604_v13, %v1600_v57 }
 0x8f0   : > { %v1606_v61 = vmul.f32 %v1605_v60, %v1600_v57 }
 0x8f2   : > { %v1607_v62 = vadd.f32 %v1606_v61, %v1600_v57 }
 0x8f4   : > { %v1608_v63 = vmul.f32 0.7978846, %v1607_v62 }
 0x8f6   : > { %2101 = vtanh.f32 %v1608_v63 }
 0x900   : > { %v2102_v1 = vpop.eup %2101 }
 0x901   : > { %v1610_v3 = vadd.f32 1.0, %v2102_v1 }
 0x903   : > { %v1611_v10 = vmul.f32 %v1610_v3, %v1603_v2 }
 0x905   : > { %1996 = vmatmul.mubr.f32.vlgmr.msra.gmra.mrb[8].mxu1 %v1611_v10 }
 0x9d8   : > { %v1701_v8 = vpop.f32.mrb[8].mxu1 }
 0x9d9   : > { %v1702_v9 = vadd.f32 %v1825_v6, %v1701_v8  ;;  %v1997_v11 = vpop.f32.mrb[9].mxu1 }
 0x9db   : > { %v1709_v12 = vmul.f32 %v1708_v7, %v1702_v9 }
 0x9dd   : > { %v1710_v14 = vadd.f32 %v1709_v12, %v2449_v5 }
 0x9df   : > { %1711 = vst.msk [vmem:[%s391_s17] sm:$0xff] %vm403_vm0, %v1710_v14 }
 0x9e0   : > { %2116 = shalt.err (!%p2113_p3)
}
 0x9e1   : > { %s2117_s26 = scalar_lea.hbm %s2542_s23, 128  ;;  %s2121_s12 = scalar_lea.hbm %s2596_s11, 256 }
 0x9e2   : > { %p2118_p4 = scmp.ne.s32.totalorder %s2542_s23, %s2117_s26  ;;  %p2122_p9 = scmp.lt.u32.totalorder %s2542_s23, %s2596_s11 }
 0x9e3   : > { %p2123_p10 = scmp.lt.u32.totalorder %s2121_s12, %s2117_s26  ;;  %p2125_p12 = scmp.lt.u32.totalorder %s2117_s26, %s2542_s23 }
 0x9e4   : > { %p2119_p7 = pnand %p2118_p4, %p2277_p5 }
 0x9e5   : > { %p2124_p11 = por %p2123_p10, %p2122_p9 }
 0x9e6   : > { %p2120_p8 = pneg %p2119_p7 }
 0x9e7   : > { %p2126_p13 = por %p2125_p12, %p2124_p11 }
 0x9e9   : > { %p2127_p0 = pnand %p2126_p13, %p2120_p8 }
 0x9eb   : > { %2130 = shalt.err (!%p2127_p0)
}
 0x9ec   : > { %2034 = dma.vmem_to_hbm [thread:$0]  (%p2277_p5), %s2544_s30, 128, %s2542_s23, %s1713_s25  }
 0x9ed PF: > { %p2040_p1 = scmp.ge.s32.totalorder %s2165_s22, 2  ;;  %s1738_s14 = sand.u32 1, %s2153_s19  }
 0x9ee   : > { %s1739_s13 = scalar_lea.sflag [#allocation4], %s1738_s14 }
 0x9ef   : > { %p2037_p2 = pnand %p2040_p1, %p2281_p6 }
 0x9f1   : > { %2148 = dma.done.wait (!%p2037_p2), %s1739_s13, 128  }
 0x9f2   : > { %2150 = vsyncadd (!%p2037_p2), %s1739_s13, 4294967168  ;;  %p22_p3 = scmp.ge.s32.totalorder %s2264_s24, 4   ;;  %s2599_s19 = smov %s2157_s20 }
 0x9f3   : > { %s2600_s20 = smov %s2161_s21  ;;  %s2601_s21 = smov %s2275_s27 }
 0x9f4   : > { %s2602_s22 = smov %s2264_s24  ;;  %24 = sbr.rel (!%p22_p3) target bundleno = 5 (0x5), region = 102 }
 0x9fb   :  { %1744 = vsyncpa [#allocation4], 1 }
 0x9fc   :  { %1746 = vsyncpa [#allocation4 + $0x1], 1 }

// kernel: tpu_custom_call.1
= control target key start
LH: loop header
LB: loop body
LE: loop exit
PB: predicated region body
PF: predicated region fallthrough
CT: control target
= control target key end

     0   :  { %s2585_s0 = inlined_call_operand.<no memory space> [shape: f32[1], index: 0, kind: input, shape index: {}]   ;;  %s2586_s1 = inlined_call_operand.vmem [shape: f32[2,8,32], index: 1, kind: input, shape index: {}]   ;;  %s2587_s2 = inlined_call_operand.vmem [shape: f32[2,6,32], index: 2, kind: input, shape index: {}]   ;;  %s2588_s3 = inlined_call_operand.vmem [shape: f32[32,96], index: 3, kind: input, shape index: {}]   ;;  %s2589_s4 = inlined_call_operand.vmem [shape: f32[1,96], index: 4, kind: input, shape index: {}]   ;;  %s2590_s5 = inlined_call_operand.vmem [shape: f32[4,8,32], index: 5, kind: input, shape index: {}]   ;;  %s2591_s6 = inlined_call_operand.vmem [shape: f32[1,32], index: 6, kind: input, shape index: {}]   ;;  %s2592_s7 = inlined_call_operand.vmem [shape: f32[32,128], index: 7, kind: input, shape index: {}]   ;;  %s2593_s8 = inlined_call_operand.vmem [shape: f32[1,128], index: 8, kind: input, shape index: {}]   ;;  %s2594_s9 = inlined_call_operand.vmem [shape: f32[128,32], index: 9, kind: input, shape index: {}]   ;;  %s2595_s10 = inlined_call_operand.vmem [shape: f32[1,32], index: 10, kind: input, shape index: {}]   ;;  %s2596_s11 = inlined_call_operand.hbm [shape: f32[2,8,32], index: 11, kind: output, shape index: {}]  }
   0x1   :  { %16 = sst [smem:[#allocation2]] %s2585_s0 }
   0x2   :  { %17 = vsyncpa [#allocation4], 0 }
   0x3   :  { %19 = vsyncpa [#allocation4 + $0x1], 0  ;;  %s2239_s19 = smov 0   ;;  %s2241_s20 = smov 0  }
   0x4   :  { %s2243_s21 = smov 0   ;;  %s2245_s22 = smov 0  }
   0x5 LB: > { %s2260_s0 = sadd.s32 4294967295, %s2165_s22   ;;  %s1797_s23 = sadd.s32 4294967294, %s2165_s22   ;;  %s2165_s22 = sphi %s2245_s22, %s2602_s22   ;;  %s2161_s21 = sphi %s2243_s21, %s2601_s21   ;;  %s2157_s20 = sphi %s2241_s20, %s2600_s20   ;;  %s2153_s19 = sphi %s2239_s19, %s2599_s19  }
   0x6   : > { %s2264_s24 = sadd.s32 1, %s2165_s22   ;;  %s273_s25 = sadd.s32 1, %s2161_s21 }
   0x7   : > { %s270_s26 = ssub.s32 %s2165_s22, %s2264_s24  ;;  %p283_p0 = scmp.ne.s32.totalorder %s2161_s21, %s2157_s20 }
   0x8   : > { %p271_p1 = scmp.eq.s32.totalorder %s270_s26, 0  ;;  %p284_p2 = scmp.eq.s32.totalorder %s2260_s0, 1 }
   0x9   : > { %p289_p3 = scmp.ne.s32.totalorder %s2157_s20, %s2153_s19  ;;  %p290_p4 = scmp.eq.s32.totalorder %s1797_s23, 1 }
   0xa   : > { %s2275_s27 = scalar_select %p271_p1, %s2161_s21, %s273_s25  }
   0xb   : > { %p2277_p5 = por %p284_p2, %p283_p0  ;;  %p2281_p6 = por %p290_p4, %p289_p3 }
   0xc   : > { %p1800_p7 = scmp.ge.s32.totalorder %s2165_s22, 1  ;;  %p349_p8 = scmp.lt.s32.totalorder %s2165_s22, 3 }
   0xe   : > { %p350_p9 = pnand %p1800_p7, %p349_p8 }
   0xf   : > { %p392_p10 = scmp.lt.s32.totalorder (!%p350_p9), %s2260_s0, 1  ;;  %vm403_vm0 = vcmask (!%p350_p9), 261120   ;;  %v429_v7 = vld [vmem:[%s2588_s3] sm:$0xff] (!%p350_p9)  ;;  %v430_v8 = vld [vmem:[%s2588_s3 + $0x8] sm:$0xff] (!%p350_p9)  ;;  %v431_v9 = vld [vmem:[%s2588_s3 + $0x10] sm:$0xff] (!%p350_p9)  ;;  %v2167_v10 = vmov (!%p350_p9), 0.0|0.0   ;;  %v419_v17 = vlaneseq (!%p350_p9) }
  0x10   : > { %353 = sbr.rel (%p350_p9) target bundleno = 2541 (0x9ed), region = 64  ;;  %1998 = vmatprep.subr.bf16.mxu0 (!%p350_p9), %v2167_v10  ;;  %v1999_v11 = vpack.c.bf16 (!%p350_p9), %v430_v8, %v429_v7  ;;  %v432_v12 = vld [vmem:[%s2588_s3 + $0x18] sm:$0xff] (!%p350_p9)  ;;  %vm2168_vm1 = vmmov (!%p350_p9), 0   ;;  %v2169_v13 = vmov (!%p350_p9), 0.0   ;;  %v1804_v30 = vld [vmem:[%s2589_s4] ss:$0 sm:$0xff] (!%p350_p9) }
  0x11   : > { %1889 = vmatprep.mubr.msk.f32.mxu0 (!%p350_p9), %vm2168_vm1, %v2169_v13  ;;  %1917 = vmatprep.subr.mxu1 (!%p350_p9), %v2169_v13  ;;  %v2002_v14 = vpack.c.bf16 (!%p350_p9), %v432_v12, %v431_v9  ;;  %v2328_v19 = vshrl.u32 (!%p350_p9), %v419_v17, 7  ;;  %s2170_s18 = smov (!%p350_p9), 104   ;;  %s2171_s23 = smov (!%p350_p9), 120   ;;  %vm522_vm2 = vcmask (!%p350_p9), 64512  }
  0x12   : > { %1919 = vmatprep.mubr.msk.f32.mxu1 (!%p350_p9), %vm2168_vm1, %v2169_v13  ;;  %2000 = vmatpush3.bf16.msra.mxu0 (!%p350_p9), %v1999_v11  ;;  %s2172_s25 = smov (!%p350_p9), 112   ;;  %s2173_s26 = smov (!%p350_p9), 96  }
  0x13   : > { %2001 = vmatprep.subr.bf16.mxu0 (!%p350_p9), %v2167_v10  ;;  %v421_v22 = vsub.s32 (!%p350_p9), 1, %v2328_v19  ;;  %v426_v23 = vsub.s32 (!%p350_p9), 0, %v2328_v19  ;;  %s2174_s13 = smov (!%p350_p9), 64   ;;  %s1827_s16 = sshll.u32 (!%p350_p9), %s2260_s0, 7 }
  0x16   : > { %2003 = vmatpush3.bf16.msra.mxu0 (!%p350_p9), %v2002_v14 }
  0x17   : > { %s2289_s30 = scalar_select %p392_p10, %s2260_s0, 1  ;;  %1892 = vmatprep.subr.mxu0 %v2169_v13 }
  0x18   : > { %s2175_s0 = smov [#allocation3]  }
  0x19   : > { %s1802_s12 = sshll.u32 %s2289_s30, 3 }
  0x1a   : > { %s395_s15 = scalar_lea.vmem %s2586_s1, %s1802_s12  ;;  %s399_s17 = scalar_lea.vmem %s2587_s2, %s1802_s12 }
  0x1b   : > { %v2297_v0 = vld [vmem:[%s395_s15] sm:$0xff] }
  0x1c   : > { %v404_v1 = vsel %vm403_vm0, %v2297_v0, 0.0  ;;  %v2330_v20 = vld [vmem:[%s399_s17] sm:$0x3f] }
  0x1d   : > { %405 = vadd.xlane.f32.xlu0 %v404_v1  ;;  %v2333_v21 = vadd.f32 1.0, %v2330_v20  ;;  %v427_v26 = vrot.slane %v2330_v20, %v426_v23 }
  0x1f   : > { %v422_v24 = vrot.slane %v2333_v21, %v421_v22 }
  0xaa   : > { %v406_v2 = vpop.xlane.xlu0 %405 }
  0xab   : > { %v408_v3 = vmul.f32 0.03125, %v406_v2 }
  0xad   : > { %v409_v4 = vsub.f32 %v2297_v0, %v408_v3 }
  0xaf   : > { %v410_v5 = vmul.f32 %v409_v4, %v409_v4 }
  0xb1   : > { %v411_v6 = vsel %vm403_vm0, %v410_v5, 0.0 }
  0xb2   : > { %412 = vadd.xlane.f32.xlu0 %v411_v6 }
 0x13f   : > { %v413_v15 = vpop.xlane.xlu0 %412 }
 0x140   : > { %v414_v16 = vmul.f32 0.03125, %v413_v15 }
 0x142   : > { %v415_v18 = vadd.f32 1e-06, %v414_v16 }
 0x144   : > { %2081 = vrsqrt.f32 %v415_v18 }
 0x14e   : > { %v2082_v25 = vpop.eup %2081 }
 0x14f   : > { %v417_v27 = vmul.f32 %v2082_v25, %v409_v4 }
 0x151   : > { %v423_v28 = vmul.f32 %v422_v24, %v417_v27 }
 0x153   : > { %v428_v29 = vadd.f32 %v427_v26, %v423_v28 }
 0x155   : > { %1890 = vmatmul.mubr.msk.f32.vlgmr.msra.gmra.mrb[0].mxu0 %vm403_vm0, %v428_v29 }
 0x156   : > { %1894 = vmatprep.mubr.msk.f32.mxu0 %vm2168_vm1, %v2169_v13 }
 0x228   : > { %v509_v31 = vpop.f32.mrb[0].mxu0 }
 0x229   : > { %v510_v32 = vadd.f32 %v1804_v30, %v509_v31  ;;  %v1891_v33 = vpop.f32.mrb[1].mxu0 }
 0x22a   : > { %v1177_v33 = vld [vmem:[%s2590_s5] sm:$0xff] }
 0x22b   : > { %518 = vrot.lane.b32.xlu0 %v510_v32, %s2170_s18  ;;  %514 = vrot.lane.b32.xlu1 %v510_v32, %s2171_s23  ;;  %s2542_s23 = scalar_lea.hbm %s2596_s11, %s1827_s16 }
 0x22f   : > { %516 = vrot.lane.b32.xlu1 %v510_v32, %s2172_s25  ;;  %s401_s25 = sld [smem:[#allocation2]] }
 0x233   : > { %520 = vrot.lane.b32.xlu1 %v510_v32, %s2173_s26 }
 0x29d   : > { %v2345_v34 = vpop.permute.xlu1 %514  ;;  %v2351_v36 = vpop.permute.xlu0 %518 }
 0x29e   : > { %597 = vrot.lane.b32.xlu1 %v2345_v34, %s2173_s26 }
 0x2a1   : > { %v2348_v35 = vpop.permute.xlu1 %516 }
 0x2a2   : > { %673 = vrot.lane.b32.xlu1 %v2348_v35, %s2173_s26 }
 0x2a5   : > { %v521_v37 = vpop.permute.xlu1 %520 }
 0x2a6   : > { %749 = vrot.lane.b32.xlu1 %v2351_v36, %s2173_s26  ;;  %1893 = vmatpush3.xpose.msk.msra.mxu0 %vm522_vm2, %v521_v37  ;;  %v1179_v37 = vld [vmem:[%s2590_s5 + $0x10] sm:$0xff]  ;;  %s389_s26 = sand.u32 1, %s2157_s20  }
 0x2a7   : > { %1897 = vmatprep.subr.mxu0 %v2169_v13 }
 0x2a9   : > { %1895 = vmatmul.mubr.msk.f32.vlgmr.msra.gmra.mrb[2].mxu0 %vm522_vm2, %v510_v32 }
 0x2aa   : > { %1899 = vmatprep.mubr.msk.f32.mxu0 %vm2168_vm1, %v2169_v13 }
 0x310   : > { %v598_v38 = vpop.permute.xlu1 %597 }
 0x311   : > { %1898 = vmatpush3.xpose.msk.msra.mxu0 %vm522_vm2, %v598_v38 }
 0x312   : > { %1902 = vmatprep.subr.mxu0 %v2169_v13 }
 0x314   : > { %1900 = vmatmul.mubr.msk.f32.vlgmr.msra.gmra.mrb[4].mxu0 %vm522_vm2, %v2345_v34  ;;  %v674_v39 = vpop.permute.xlu1 %673 }
 0x315   : > { %1903 = vmatpush3.xpose.msk.msra.mxu0 %vm522_vm2, %v674_v39  ;;  %1904 = vmatprep.mubr.msk.f32.mxu0 %vm2168_vm1, %v2169_v13 }
 0x316   : > { %1907 = vmatprep.subr.mxu0 %v2169_v13 }
 0x318   : > { %1905 = vmatmul.mubr.msk.f32.vlgmr.msra.gmra.mrb[6].mxu0 %vm522_vm2, %v2348_v35  ;;  %v750_v40 = vpop.permute.xlu1 %749 }
 0x319   : > { %1908 = vmatpush3.xpose.msk.msra.mxu0 %vm522_vm2, %v750_v40  ;;  %1909 = vmatprep.mubr.msk.f32.mxu0 %vm2168_vm1, %v2169_v13  ;;  %v1180_v40 = vld [vmem:[%s2590_s5 + $0x18] sm:$0xff] }
 0x31a   : > { %1912 = vmatprep.subr.mxu0 %v2169_v13 }
 0x31c   : > { %1910 = vmatmul.mubr.msk.f32.vlgmr.msra.gmra.mrb[8].mxu0 %vm522_vm2, %v2351_v36 }
 0x31d   : > { %1914 = vmatprep.mubr.msk.f32.mxu0 %vm2168_vm1, %v2169_v13 }
 0x37c   : > { %v593_v41 = vpop.f32.mrb[2].mxu0 }
 0x37d   : > { %v825_v42 = vmul.f32 0.35355338, %v593_v41  ;;  %v1896_v43 = vpop.f32.mrb[3].mxu0 }
 0x37f   : > { %v829_v44 = vsel %vm522_vm2, %v825_v42, -inf }
 0x380   : > { %830 = vmax.xlane.f32.xlu1 %v829_v44 }
 0x3e7   : > { %v669_v45 = vpop.f32.mrb[4].mxu0 }
 0x3e8   : > { %v826_v46 = vmul.f32 0.35355338, %v669_v45  ;;  %v1901_v47 = vpop.f32.mrb[5].mxu0 }
 0x3ea   : > { %v832_v48 = vsel %vm522_vm2, %v826_v46, -inf }
 0x3eb   : > { %833 = vmax.xlane.f32.xlu0 %v832_v48  ;;  %v745_v49 = vpop.f32.mrb[6].mxu0 }
 0x3ec   : > { %v827_v50 = vmul.f32 0.35355338, %v745_v49  ;;  %v1906_v51 = vpop.f32.mrb[7].mxu0 }
 0x3ee   : > { %v835_v52 = vsel %vm522_vm2, %v827_v50, -inf }
 0x3ef   : > { %836 = vmax.xlane.f32.xlu1 %v835_v52  ;;  %v821_v53 = vpop.f32.mrb[8].mxu0 }
 0x3f0   : > { %v828_v54 = vmul.f32 0.35355338, %v821_v53  ;;  %v1911_v55 = vpop.f32.mrb[9].mxu0 }
 0x3f2   : > { %v838_v56 = vsel %vm522_vm2, %v828_v54, -inf }
 0x3f3   : > { %839 = vmax.xlane.f32.xlu0 %v838_v56 }
 0x400   : > { %873 = vrot.lane.b32.xlu1 %v510_v32, %s2174_s13 }
 0x40d   : > { %v831_v57 = vpop.xlane.xlu1 %830 }
 0x40e   : > { %v841_v58 = vsub.f32 %v825_v42, %v831_v57 }
 0x410   : > { %v845_v59 = vmul.f32 1.442695, %v841_v58 }
 0x412   : > { %2083 = vpow2.f32 %v845_v59 }
 0x41c   : > { %v2084_v60 = vpop.eup %2083 }
 0x41d   : > { %v853_v61 = vsel %vm522_vm2, %v2084_v60, 0.0 }
 0x424   : > { %854 = vadd.xlane.f32.xlu1 %v853_v61 }
 0x478   : > { %v834_v62 = vpop.xlane.xlu0 %833 }
 0x479   : > { %v842_v63 = vsub.f32 %v826_v46, %v834_v62  ;;  %v1822_v62 = vld [vmem:[%s2591_s6] ss:$0 sm:$0xff] }
 0x47b   : > { %v847_v1 = vmul.f32 1.442695, %v842_v63 }
 0x47c   : > { %v837_v2 = vpop.xlane.xlu1 %836 }
 0x47d   : > { %2085 = vpow2.f32 %v847_v1  ;;  %v843_v3 = vsub.f32 %v827_v50, %v837_v2 }
 0x47f   : > { %v849_v4 = vmul.f32 1.442695, %v843_v3 }
 0x480   : > { %v874_v5 = vpop.permute.xlu1 %873  ;;  %v840_v6 = vpop.xlane.xlu0 %839 }
 0x481   : > { %2087 = vpow2.f32 %v849_v4  ;;  %v844_v7 = vsub.f32 %v828_v54, %v840_v6  ;;  %1913 = vmatpush3.msra.mxu0 %v874_v5  ;;  %v1488_v54 = vstv %s401_s25  ;;  %s1713_s25 = scalar_lea.sflag [#allocation4], %s389_s26 }
 0x482   : > { %1922 = vmatprep.subr.mxu0 %v2169_v13  ;;  %v2440_v58 = vmul.f32 %v1488_v54, %v2330_v20 }
 0x483   : > { %v851_v8 = vmul.f32 1.442695, %v844_v7 }
 0x485   : > { %2089 = vpow2.f32 %v851_v8 }
 0x487   : > { %v2086_v9 = vpop.eup %2085 }
 0x488   : > { %v856_v11 = vsel %vm522_vm2, %v2086_v9, 0.0 }
 0x489   : > { %857 = vadd.xlane.f32.xlu0 %v856_v11 }
 0x48b   : > { %v2088_v12 = vpop.eup %2087 }
 0x48c   : > { %v859_v14 = vsel %vm522_vm2, %v2088_v12, 0.0 }
 0x48d   : > { %860 = vadd.xlane.f32.xlu1 %v859_v14  ;;  %v1519_v14 = vld [vmem:[%s2592_s7] sm:$0xff] }
 0x48f   : > { %v2090_v15 = vpop.eup %2089 }
 0x490   : > { %v862_v16 = vsel %vm522_vm2, %v2090_v15, 0.0 }
 0x491   : > { %863 = vadd.xlane.f32.xlu0 %v862_v16  ;;  %v1521_v16 = vld [vmem:[%s2592_s7 + $0x10] sm:$0xff] }
 0x49e   : > { %1025 = vrot.lane.b32.xlu1 %v2348_v35, %s2174_s13 }
 0x4a2   : > { %1101 = vrot.lane.b32.xlu1 %v2351_v36, %s2174_s13  ;;  %v1178_v36 = vld [vmem:[%s2590_s5 + $0x8] sm:$0xff] }
 0x4a7   : > { %949 = vrot.lane.b32.xlu0 %v2345_v34, %s2174_s13  ;;  %s1801_s13 = sshll.u32 %s389_s26, 3 }
 0x4a8   : > { %s391_s17 = scalar_lea.vmem [#allocation3], %s1801_s13  ;;  %s2107_s13 = sshll.u32 %s2175_s0, 4  ;;  %s2108_s13 = int_to_ptr.vmem [resolvable:$false] %s2107_s13 }
 0x4a9   : > { %s1726_s30 = sshll.u32 %s391_s17, 4  ;;  %s2109_s15 = scalar_lea.vmem %s2108_s13, 256  ;;  %s2544_s30 = int_to_ptr.vmem [resolvable:$true] %s1726_s30 }
 0x4aa   : > { %s2103_s14 = scalar_lea.vmem %s2544_s30, 128  ;;  %p2110_p0 = scmp.lt.s32.totalorder %s2544_s30, %s2108_s13 }
 0x4ab   : > { %p2104_p11 = scmp.ne.s32.totalorder %s2544_s30, %s2103_s14  ;;  %p2111_p1 = scmp.lt.s32.totalorder %s2109_s15, %s2103_s14 }
 0x4ad   : > { %p2105_p12 = pnand %p2104_p11, %p2277_p5  ;;  %p2112_p2 = por %p2111_p1, %p2110_p0 }
 0x4af   : > { %p2106_p13 = pneg %p2105_p12 }
 0x4b1   : > { %v855_v17 = vpop.xlane.xlu1 %854  ;;  %p2113_p3 = pnand %p2112_p2, %p2106_p13 }
 0x4b2   : > { %2091 = vrcp.f32 %v855_v17  ;;  %v1522_v17 = vld [vmem:[%s2592_s7 + $0x18] sm:$0xff] }
 0x4bc   : > { %v2092_v18 = vpop.eup %2091 }
 0x4bd   : > { %v869_v22 = vmul.f32 %v2092_v18, %v2084_v60  ;;  %v2008_v18 = vpack.c.bf16 %v1522_v17, %v1521_v16 }
 0x4bf   : > { %1915 = vmatmul.mubr.msk.f32.vlgmr.msra.gmra.mrb[10].mxu0 %vm522_vm2, %v869_v22  ;;  %v1612_v22 = vld [vmem:[%s2594_s9] sm:$0xff] }
 0x4c0   : > { %1924 = vmatprep.mubr.msk.f32.mxu0 %vm2168_vm1, %v2169_v13 }
 0x516   : > { %v858_v23 = vpop.xlane.xlu0 %857 }
 0x517   : > { %2093 = vrcp.f32 %v858_v23  ;;  %v1613_v23 = vld [vmem:[%s2594_s9 + $0x8] sm:$0xff] }
 0x51a   : > { %v861_v24 = vpop.xlane.xlu1 %860 }
 0x51b   : > { %2095 = vrcp.f32 %v861_v24  ;;  %v2011_v24 = vpack.c.bf16 %v1613_v23, %v1612_v22 }
 0x51e   : > { %v1026_v25 = vpop.permute.xlu1 %1025  ;;  %v864_v26 = vpop.xlane.xlu0 %863 }
 0x51f   : > { %2097 = vrcp.f32 %v864_v26  ;;  %1923 = vmatpush3.msra.mxu0 %v1026_v25 }
 0x520   : > { %1932 = vmatprep.subr.mxu0 %v2169_v13 }
 0x521   : > { %v2094_v27 = vpop.eup %2093 }
 0x522   : > { %v950_v28 = vpop.permute.xlu0 %949  ;;  %v870_v29 = vmul.f32 %v2094_v27, %v2086_v9  ;;  %v1102_v30 = vpop.permute.xlu1 %1101 }
 0x523   : > { %1918 = vmatpush3.msra.mxu1 %v950_v28  ;;  %v1511_v28 = vsub.s32 4, %v2328_v19 }
 0x524   : > { %1920 = vmatmul.mubr.msk.f32.vlgmr.msra.gmra.mrb[0].mxu1 %vm522_vm2, %v870_v29  ;;  %1927 = vmatprep.subr.mxu1 %v2169_v13  ;;  %v1516_v29 = vsub.s32 3, %v2328_v19 }
 0x525   : > { %v2096_v31 = vpop.eup %2095  ;;  %1928 = vmatpush3.msra.mxu1 %v1102_v30  ;;  %1929 = vmatprep.mubr.msk.f32.mxu1 %vm2168_vm1, %v2169_v13  ;;  %v1512_v30 = vrot.slane %v2333_v21, %v1511_v28  ;;  %v1617_v21 = vld [vmem:[%s2594_s9 + $0x28] sm:$0xff] }
 0x526   : > { %v871_v32 = vmul.f32 %v2096_v31, %v2088_v12  ;;  %1937 = vmatprep.subr.mxu1 %v2169_v13 }
 0x528   : > { %1925 = vmatmul.mubr.msk.f32.vlgmr.msra.gmra.mrb[12].mxu0 %vm522_vm2, %v871_v32  ;;  %v1517_v32 = vrot.slane %v2330_v20, %v1516_v29  ;;  %v1616_v20 = vld [vmem:[%s2594_s9 + $0x20] sm:$0xff] }
 0x529   : > { %v2098_v34 = vpop.eup %2097  ;;  %1933 = vmatpush3.msra.mxu0 %v1177_v33  ;;  %1934 = vmatprep.mubr.msk.f32.mxu0 %vm2168_vm1, %v2169_v13 }
 0x52a   : > { %v872_v35 = vmul.f32 %v2098_v34, %v2090_v15  ;;  %1942 = vmatprep.subr.mxu0 %v2169_v13 }
 0x52c   : > { %1930 = vmatmul.mubr.msk.f32.vlgmr.msra.gmra.mrb[2].mxu1 %vm522_vm2, %v872_v35 }
 0x52d   : > { %1939 = vmatprep.mubr.msk.f32.mxu1 %vm2168_vm1, %v2169_v13  ;;  %1938 = vmatpush3.msra.mxu1 %v1178_v36  ;;  %v1614_v36 = vld [vmem:[%s2594_s9 + $0x10] sm:$0xff] }
 0x52e   : > { %1947 = vmatprep.subr.mxu1 %v2169_v13 }
 0x592   : > { %v945_v38 = vpop.f32.mrb[10].mxu0 }
 0x593   : > { %v1916_v39 = vpop.f32.mrb[11].mxu0  ;;  %1935 = vmatmul.mubr.msk.f32.vlgmr.msra.gmra.mrb[14].mxu0 %vm522_vm2, %v945_v38 }
 0x594   : > { %1943 = vmatpush3.msra.mxu0 %v1179_v37  ;;  %1944 = vmatprep.mubr.msk.f32.mxu0 %vm2168_vm1, %v2169_v13  ;;  %v1615_v37 = vld [vmem:[%s2594_s9 + $0x18] sm:$0xff]  ;;  %v2017_v39 = vpack.c.bf16 %v1617_v21, %v1616_v20 }
 0x595   : > { %2004 = vmatprep.subr.bf16.mxu0 %v2167_v10  ;;  %v2014_v38 = vpack.c.bf16 %v1615_v37, %v1614_v36 }
 0x5f7   : > { %v1021_v41 = vpop.f32.mrb[0].mxu1 }
 0x5f8   : > { %v1921_v42 = vpop.f32.mrb[1].mxu1  ;;  %1940 = vmatmul.mubr.msk.f32.vlgmr.msra.gmra.mrb[4].mxu1 %vm522_vm2, %v1021_v41  ;;  %v1619_v41 = vld [vmem:[%s2594_s9 + $0x38] sm:$0xff] }
 0x5f9   : > { %1948 = vmatpush3.msra.mxu1 %v1180_v40  ;;  %1949 = vmatprep.mubr.msk.f32.mxu1 %vm2168_vm1, %v2169_v13  ;;  %v1618_v40 = vld [vmem:[%s2594_s9 + $0x30] sm:$0xff] }
 0x5fa   : > { %2010 = vmatprep.subr.bf16.mxu1 %v2167_v10  ;;  %v2020_v42 = vpack.c.bf16 %v1619_v41, %v1618_v40 }
 0x5fb   : > { %v1097_v43 = vpop.f32.mrb[12].mxu0 }
 0x5fc   : > { %v1926_v44 = vpop.f32.mrb[13].mxu0  ;;  %1945 = vmatmul.mubr.msk.f32.vlgmr.msra.gmra.mrb[16].mxu0 %vm522_vm2, %v1097_v43  ;;  %v1620_v43 = vld [vmem:[%s2594_s9 + $0x40] sm:$0xff] }
 0x5fd   : > { %1960 = vmatprep.mubr.msk.f32.mxu0 %vm2168_vm1, %v2169_v13  ;;  %v1621_v44 = vld [vmem:[%s2594_s9 + $0x48] sm:$0xff] }
 0x5ff   : > { %v1173_v45 = vpop.f32.mrb[2].mxu1 }
 0x600   : > { %v1931_v46 = vpop.f32.mrb[3].mxu1  ;;  %1950 = vmatmul.mubr.msk.f32.vlgmr.msra.gmra.mrb[6].mxu1 %vm522_vm2, %v1173_v45  ;;  %v2023_v45 = vpack.c.bf16 %v1621_v44, %v1620_v43 }
 0x601   : > { %1995 = vmatprep.mubr.msk.f32.mxu1 %vm2168_vm1, %v2169_v13  ;;  %v1492_v13 = vsub.s32 2, %v2328_v19  ;;  %2012 = vmatpush3.bf16.msra.mxu1 %v2011_v24  ;;  %v1622_v46 = vld [vmem:[%s2594_s9 + $0x50] sm:$0xff] }
 0x602   : > { %2013 = vmatprep.subr.bf16.mxu1 %v2167_v10 }
 0x603   : > { %v1493_v2 = vrot.slane %v2440_v58, %v1492_v13 }
 0x605   : > { %2015 = vmatpush3.bf16.msra.mxu1 %v2014_v38 }
 0x606   : > { %2016 = vmatprep.subr.bf16.mxu1 %v2167_v10 }
 0x609   : > { %2018 = vmatpush3.bf16.msra.mxu1 %v2017_v39 }
 0x60a   : > { %2019 = vmatprep.subr.bf16.mxu1 %v2167_v10 }
 0x60d   : > { %2021 = vmatpush3.bf16.msra.mxu1 %v2020_v42 }
 0x60e   : > { %2022 = vmatprep.subr.bf16.mxu1 %v2167_v10 }
 0x611   : > { %2024 = vmatpush3.bf16.msra.mxu1 %v2023_v45 }
 0x612   : > { %2025 = vmatprep.subr.bf16.mxu1 %v2167_v10 }
 0x666   : > { %v1250_v47 = vpop.f32.mrb[14].mxu0 }
 0x667   : > { %v1936_v48 = vpop.f32.mrb[15].mxu0  ;;  %v1473_v50 = vsel %vm403_vm0, %v1250_v47, 0.0  ;;  %v1623_v47 = vld [vmem:[%s2594_s9 + $0x58] sm:$0xff] }
 0x668   : > { %v2026_v48 = vpack.c.bf16 %v1623_v47, %v1622_v46 }
 0x66a   : > { %2027 = vmatpush3.bf16.msra.mxu1 %v2026_v48 }
 0x66b   : > { %2028 = vmatprep.subr.bf16.mxu1 %v2167_v10 }
 0x6cb   : > { %v1323_v49 = vpop.f32.mrb[4].mxu1 }
 0x6cc   : > { %v1474_v51 = vsel %vm403_vm0, %v1323_v49, 0.0  ;;  %v1941_v52 = vpop.f32.mrb[5].mxu1  ;;  %v1624_v49 = vld [vmem:[%s2594_s9 + $0x60] sm:$0xff] }
 0x6cd   : > { %v1475_v53 = vadd.f32 %v1474_v51, %v1473_v50  ;;  %v1625_v50 = vld [vmem:[%s2594_s9 + $0x68] sm:$0xff]  ;;  %v1626_v52 = vld [vmem:[%s2594_s9 + $0x70] sm:$0xff] }
 0x6ce   : > { %v2029_v51 = vpack.c.bf16 %v1625_v50, %v1624_v49 }
 0x6cf   : > { %v1396_v55 = vpop.f32.mrb[16].mxu0 }
 0x6d0   : > { %v1476_v56 = vsel %vm403_vm0, %v1396_v55, 0.0  ;;  %v1946_v57 = vpop.f32.mrb[17].mxu0  ;;  %2030 = vmatpush3.bf16.msra.mxu1 %v2029_v51  ;;  %v1823_v55 = vld [vmem:[%s2593_s8] ss:$0 sm:$0xff] }
 0x6d1   : > { %v1477_v59 = vadd.f32 %v1476_v56, %v1475_v53  ;;  %v1627_v53 = vld [vmem:[%s2594_s9 + $0x78] sm:$0xff]  ;;  %2031 = vmatprep.subr.bf16.mxu1 %v2167_v10 }
 0x6d2   : > { %v2032_v54 = vpack.c.bf16 %v1627_v53, %v1626_v52 }
 0x6d3   : > { %v1469_v60 = vpop.f32.mrb[6].mxu1 }
 0x6d4   : > { %v1478_v61 = vsel %vm403_vm0, %v1469_v60, 0.0  ;;  %v1951_v63 = vpop.f32.mrb[7].mxu1  ;;  %2033 = vmatpush3.bf16.msra.mxu1 %v2032_v54 }
 0x6d5   : > { %v1479_v1 = vadd.f32 %v1478_v61, %v1477_v59 }
 0x6d7   : > { %v1487_v3 = vadd.f32 %v1822_v62, %v1479_v1 }
 0x6d9   : > { %v1494_v4 = vmul.f32 %v1493_v2, %v1487_v3 }
 0x6db   : > { %v2449_v5 = vadd.f32 %v1494_v4, %v2297_v0  ;;  %v1520_v0 = vld [vmem:[%s2592_s7 + $0x8] sm:$0xff]  ;;  %v1707_v4 = vsub.s32 5, %v2328_v19 }
 0x6dc   : > { %v2005_v15 = vpack.c.bf16 %v1520_v0, %v1519_v14 }
 0x6dd   : > { %v1496_v6 = vsel %vm403_vm0, %v2449_v5, 0.0 }
 0x6de   : > { %1497 = vadd.xlane.f32.xlu0 %v1496_v6  ;;  %2006 = vmatpush3.bf16.msra.mxu0 %v2005_v15  ;;  %v1825_v6 = vld [vmem:[%s2595_s10] ss:$0 sm:$0xff] }
 0x6df   : > { %2007 = vmatprep.subr.bf16.mxu0 %v2167_v10 }
 0x6e2   : > { %2009 = vmatpush3.bf16.msra.mxu0 %v2008_v18 }
 0x76b   : > { %v1498_v7 = vpop.xlane.xlu0 %1497 }
 0x76c   : > { %v1499_v8 = vmul.f32 0.03125, %v1498_v7  ;;  %v1708_v7 = vrot.slane %v2440_v58, %v1707_v4 }
 0x76e   : > { %v1500_v9 = vsub.f32 %v2449_v5, %v1499_v8 }
 0x770   : > { %v1501_v11 = vmul.f32 %v1500_v9, %v1500_v9 }
 0x772   : > { %v1502_v12 = vsel %vm403_vm0, %v1501_v11, 0.0 }
 0x773   : > { %1503 = vadd.xlane.f32.xlu1 %v1502_v12 }
 0x800   : > { %v1504_v25 = vpop.xlane.xlu1 %1503 }
 0x801   : > { %v1505_v26 = vmul.f32 0.03125, %v1504_v25 }
 0x803   : > { %v1506_v27 = vadd.f32 1e-06, %v1505_v26 }
 0x805   : > { %2099 = vrsqrt.f32 %v1506_v27 }
 0x80f   : > { %v2100_v31 = vpop.eup %2099 }
 0x810   : > { %v1508_v33 = vmul.f32 %v2100_v31, %v1500_v9 }
 0x812   : > { %v1513_v34 = vmul.f32 %v1512_v30, %v1508_v33 }
 0x814   : > { %v1518_v35 = vadd.f32 %v1517_v32, %v1513_v34 }
 0x816   : > { %1961 = vmatmul.mubr.msk.f32.vlgmr.msra.gmra.mrb[18].mxu0 %vm403_vm0, %v1518_v35 }
 0x8e9   : > { %v1599_v56 = vpop.f32.mrb[18].mxu0 }
 0x8ea   : > { %v1600_v57 = vadd.f32 %v1823_v55, %v1599_v56  ;;  %v1962_v59 = vpop.f32.mrb[19].mxu0 }
 0x8ec   : > { %v1604_v13 = vmul.f32 0.044715, %v1600_v57  ;;  %v1603_v2 = vmul.f32 0.5, %v1600_v57 }
 0x8ee   : > { %v1605_v60 = vmul.f32 %v1604_v13, %v1600_v57 }
 0x8f0   : > { %v1606_v61 = vmul.f32 %v1605_v60, %v1600_v57 }
 0x8f2   : > { %v1607_v62 = vadd.f32 %v1606_v61, %v1600_v57 }
 0x8f4   : > { %v1608_v63 = vmul.f32 0.7978846, %v1607_v62 }
 0x8f6   : > { %2101 = vtanh.f32 %v1608_v63 }
 0x900   : > { %v2102_v1 = vpop.eup %2101 }
 0x901   : > { %v1610_v3 = vadd.f32 1.0, %v2102_v1 }
 0x903   : > { %v1611_v10 = vmul.f32 %v1610_v3, %v1603_v2 }
 0x905   : > { %1996 = vmatmul.mubr.f32.vlgmr.msra.gmra.mrb[8].mxu1 %v1611_v10 }
 0x9d8   : > { %v1701_v8 = vpop.f32.mrb[8].mxu1 }
 0x9d9   : > { %v1702_v9 = vadd.f32 %v1825_v6, %v1701_v8  ;;  %v1997_v11 = vpop.f32.mrb[9].mxu1 }
 0x9db   : > { %v1709_v12 = vmul.f32 %v1708_v7, %v1702_v9 }
 0x9dd   : > { %v1710_v14 = vadd.f32 %v1709_v12, %v2449_v5 }
 0x9df   : > { %1711 = vst.msk [vmem:[%s391_s17] sm:$0xff] %vm403_vm0, %v1710_v14 }
 0x9e0   : > { %2116 = shalt.err (!%p2113_p3)
}
 0x9e1   : > { %s2117_s26 = scalar_lea.hbm %s2542_s23, 128  ;;  %s2121_s12 = scalar_lea.hbm %s2596_s11, 256 }
 0x9e2   : > { %p2118_p4 = scmp.ne.s32.totalorder %s2542_s23, %s2117_s26  ;;  %p2122_p9 = scmp.lt.u32.totalorder %s2542_s23, %s2596_s11 }
 0x9e3   : > { %p2123_p10 = scmp.lt.u32.totalorder %s2121_s12, %s2117_s26  ;;  %p2125_p12 = scmp.lt.u32.totalorder %s2117_s26, %s2542_s23 }
 0x9e4   : > { %p2119_p7 = pnand %p2118_p4, %p2277_p5 }
 0x9e5   : > { %p2124_p11 = por %p2123_p10, %p2122_p9 }
 0x9e6   : > { %p2120_p8 = pneg %p2119_p7 }
 0x9e7   : > { %p2126_p13 = por %p2125_p12, %p2124_p11 }
 0x9e9   : > { %p2127_p0 = pnand %p2126_p13, %p2120_p8 }
 0x9eb   : > { %2130 = shalt.err (!%p2127_p0)
}
 0x9ec   : > { %2034 = dma.vmem_to_hbm [thread:$0]  (%p2277_p5), %s2544_s30, 128, %s2542_s23, %s1713_s25  }
 0x9ed PF: > { %p2040_p1 = scmp.ge.s32.totalorder %s2165_s22, 2  ;;  %s1738_s14 = sand.u32 1, %s2153_s19  }
 0x9ee   : > { %s1739_s13 = scalar_lea.sflag [#allocation4], %s1738_s14 }
 0x9ef   : > { %p2037_p2 = pnand %p2040_p1, %p2281_p6 }
 0x9f1   : > { %2148 = dma.done.wait (!%p2037_p2), %s1739_s13, 128  }
 0x9f2   : > { %2150 = vsyncadd (!%p2037_p2), %s1739_s13, 4294967168  ;;  %p22_p3 = scmp.ge.s32.totalorder %s2264_s24, 4   ;;  %s2599_s19 = smov %s2157_s20 }
 0x9f3   : > { %s2600_s20 = smov %s2161_s21  ;;  %s2601_s21 = smov %s2275_s27 }
 0x9f4   : > { %s2602_s22 = smov %s2264_s24  ;;  %24 = sbr.rel (!%p22_p3) target bundleno = 5 (0x5), region = 102 }
 0x9fb   :  { %1744 = vsyncpa [#allocation4], 1 }
 0x9fc   :  { %1746 = vsyncpa [#allocation4 + $0x1], 1 }

</bundles_post_ra>
